<compile_context>
chip_gen: v5e
topology: v5e:2x2
jax: 0.10.0
libtpu: 0.0.40
codegen_flags: <defaults>
</compile_context>

<pallas_src>
import functools

import jax
import jax.numpy as jnp
from jax.experimental import pallas as pl
from jax.experimental.pallas import tpu as pltpu


def cnn_attention_kernel(x_ref, wc_ref, bc_ref, wf_ref, bf_ref, o_ref, *, heads, hd):
    Bt, L, D = x_ref.shape
    n = Bt * L
    HH = heads * hd

    x = x_ref[...].reshape(n, D)                      # tokens on the sublane axis

    # ---- Conv1d(k=3, pad=1) as a single K=3D matmul ---------------------------------
    # within-sequence position of every flattened token row
    pos = jax.lax.broadcasted_iota(jnp.int32, (Bt, L, 1), 1).reshape(n, 1)
    x_m1 = jnp.where(pos == 0, 0.0, pltpu.roll(x, shift=1, axis=0))          # x[l-1]
    x_p1 = jnp.where(pos == L - 1, 0.0, pltpu.roll(x, shift=n - 1, axis=0))  # x[l+1]
    xa = jnp.concatenate([x_m1, x, x_p1], axis=-1)    # (n, 3D)
    conv = jnp.dot(xa, wc_ref[...], preferred_element_type=jnp.float32) + bc_ref[...]
    qkv = conv * jax.nn.sigmoid(conv)                 # swish, (n, 3*heads*hd)

    # ---- per-head attention, batch-fused over Bt -------------------------------------
    qkv3 = qkv.reshape(Bt, L, 3 * HH)                 # leading-dim regroup (no relayout)
    scale = 1.0 / jnp.sqrt(jnp.float32(L))
    head_outs = []
    for h in range(heads):                            # static unroll, heads is tiny
        base = h * 3 * hd
        q = qkv3[:, :, base:base + hd] * scale        # fold 1/sqrt(L) into q
        k = qkv3[:, :, base + hd:base + 2 * hd]
        v = qkv3[:, :, base + 2 * hd:base + 3 * hd]
        logits = jnp.einsum('bld,bmd->blm', q, k, preferred_element_type=jnp.float32)
        logits = logits - jnp.max(logits, axis=-1, keepdims=True)
        p = jnp.exp(logits)
        denom = jnp.sum(p, axis=-1, keepdims=True)    # (Bt, L, 1)
        pv = jnp.einsum('blm,bmd->bld', p, v, preferred_element_type=jnp.float32)
        inv = pl.reciprocal(denom, approx=True)       # EUP slot
        inv = inv * (2.0 - denom * inv)               # one Newton step -> f32 accuracy
        head_outs.append(pv * inv)                    # normalize AFTER the PV matmul
    new_v = jnp.concatenate(head_outs, axis=-1).reshape(n, HH)

    # ---- fcfc + swish + residual + layer_norm -----------------------------------------
    m = jnp.dot(new_v, wf_ref[...], preferred_element_type=jnp.float32) + bf_ref[...]
    m = m * jax.nn.sigmoid(m)
    y = x * 2.0 + m
    mu = jnp.mean(y, axis=-1, keepdims=True)
    var = jnp.mean(jnp.square(y - mu), axis=-1, keepdims=True)
    out = (y - mu) * jax.lax.rsqrt(var + 1e-5)
    o_ref[...] = out.reshape(Bt, L, D)


def cnn_attention(x, wc, bc, wf, bf, *, heads, hd, block_b=4):
    """x: [B, L, D] f32. wc: [3, D, heads*hd*3]. bc: [1, heads*hd*3].
    wf: [heads*hd, D]. bf: [1, D]."""
    B, L, D = x.shape
    O = heads * hd * 3
    HH = heads * hd
    bt = max(1, min(block_b, B))
    nb = pl.cdiv(B, bt)
    Bp = nb * bt
    if Bp != B:                                       # pad batch to a multiple of bt
        x = jnp.concatenate([x, jnp.zeros((Bp - B, L, D), x.dtype)], axis=0)

    wc_fused = wc.reshape(3 * D, O)                   # [W_{l-1}; W_l; W_{l+1}] stacked

    kernel = functools.partial(cnn_attention_kernel, heads=heads, hd=hd)
    tokens = Bp * L
    cost = pl.CostEstimate(
        flops=(2 * tokens * (3 * D) * O               # fused conv matmul
               + 4 * Bp * heads * L * L * hd          # QK^T + PV
               + 2 * tokens * HH * D),                # fcfc
        transcendentals=tokens * O + Bp * heads * L * L + tokens * D,
        bytes_accessed=4 * (2 * tokens * D + 3 * D * O + O + HH * D + D))

    out = pl.pallas_call(
        kernel,
        out_shape=jax.ShapeDtypeStruct((Bp, L, D), jnp.float32),
        grid_spec=pltpu.PrefetchScalarGridSpec(
            num_scalar_prefetch=0,
            grid=(nb,),
            in_specs=[
                pl.BlockSpec((bt, L, D), lambda b: (b, 0, 0)),
                pl.BlockSpec((3 * D, O), lambda b: (0, 0)),
                pl.BlockSpec((1, O), lambda b: (0, 0)),
                pl.BlockSpec((HH, D), lambda b: (0, 0)),
                pl.BlockSpec((1, D), lambda b: (0, 0)),
            ],
            out_specs=pl.BlockSpec((bt, L, D), lambda b: (b, 0, 0)),
        ),
        compiler_params=pltpu.CompilerParams(
            dimension_semantics=("parallel",),
            vmem_limit_bytes=32 * 1024 * 1024),
        cost_estimate=cost,
    )(x, wc_fused, bc, wf, bf)
    return out[:B]


def cnn_attention_ref(x, wc, bc, wf, bf, *, heads, hd):
    """Pure-JAX reference mirroring the PyTorch forward (eval mode)."""
    B, L, D = x.shape
    xt = jnp.transpose(x, (0, 2, 1))                       # [B, D, L]
    xp = jnp.pad(xt, ((0, 0), (0, 0), (1, 1)))
    conv = sum(jnp.einsum('bcl,co->bol', xp[:, :, k:k + L], wc[k]) for k in range(3))
    conv = conv + bc[0][None, :, None]                     # [B, O, L]
    qkv = conv * jax.nn.sigmoid(conv)
    qkv = qkv.reshape(B, heads, 3 * hd, L)
    q, k_, v = qkv[:, :, :hd], qkv[:, :, hd:2 * hd], qkv[:, :, 2 * hd:]
    att = jax.nn.softmax(
        jnp.einsum('bhdw,bhdm->bhwm', q, k_) / jnp.sqrt(jnp.float32(L)), axis=-1)
    new_v = jnp.einsum('bhwm,bhdm->bwhd', att, v).reshape(B, L, heads * hd)
    m = new_v @ wf + bf[0]
    m = m * jax.nn.sigmoid(m)
    y = x * 2.0 + m
    mu = y.mean(-1, keepdims=True)
    var = ((y - mu) ** 2).mean(-1, keepdims=True)
    return (y - mu) / jnp.sqrt(var + 1e-5)


if __name__ == "__main__":
    # Small shapes consistent with the module: dims=32, hd=16, heads=2, L=16, B=8
    # (B=8 with block_b=4 gives a 2-wide parallel grid -> both v7x TensorCores get work).
    B, L, dims, hd, heads = 8, 16, 32, 16, 2
    O = heads * hd * 3

    key = jax.random.PRNGKey(0)
    k_x, k_wc, k_bc, k_wf, k_bf = jax.random.split(key, 5)
    x = jax.random.normal(k_x, (B, L, dims), dtype=jnp.float32)
    # Deterministic synthetic parameters (shapes follow the module __init__).
    wc = 0.1 * jax.random.normal(k_wc, (3, dims, O), dtype=jnp.float32)        # conv weight [k, C_in, C_out]
    bc = 0.1 * jax.random.normal(k_bc, (1, O), dtype=jnp.float32)              # conv bias
    wf = 0.1 * jax.random.normal(k_wf, (heads * hd, dims), dtype=jnp.float32)  # fcfc weight (transposed)
    bf = 0.1 * jax.random.normal(k_bf, (1, dims), dtype=jnp.float32)           # fcfc bias

    out = cnn_attention(x, wc, bc, wf, bf, heads=heads, hd=hd, block_b=4)
    out = jax.block_until_ready(out)

    ref = cnn_attention_ref(x, wc, bc, wf, bf, heads=heads, hd=hd)
    assert out.shape == (B, L, dims)
    assert jnp.allclose(out, ref, atol=1e-3, rtol=1e-3), "mismatch vs JAX reference"

    print("KERNEL_OK")
</pallas_src>

<mosaic_0001>
module attributes {stable_mosaic.version = 11 : i64} {
  func.func @cnn_attention_kernel(%arg0: i32, %arg1: memref<4x16x32xf32, #tpu.memory_space<vmem>>, %arg2: memref<96x96xf32, #tpu.memory_space<vmem>>, %arg3: memref<1x96xf32, #tpu.memory_space<vmem>>, %arg4: memref<32x32xf32, #tpu.memory_space<vmem>>, %arg5: memref<1x32xf32, #tpu.memory_space<vmem>>, %arg6: memref<4x16x32xf32, #tpu.memory_space<vmem>>) attributes {dimension_semantics = [#tpu.dimension_semantics<parallel>], iteration_bounds = array<i64: 2>, scalar_prefetch = 0 : i64, scratch_operands = 0 : i64, tpu.core_type = #tpu.core_type<tc>, window_params = [{transform_indices = @transform_0, window_bounds = array<i64: 4, 16, 32>}, {pipeline_mode = #tpu.pipeline_mode<synchronous>, transform_indices = @transform_1, window_bounds = array<i64: 96, 96>}, {pipeline_mode = #tpu.pipeline_mode<synchronous>, transform_indices = @transform_2, window_bounds = array<i64: 1, 96>}, {pipeline_mode = #tpu.pipeline_mode<synchronous>, transform_indices = @transform_3, window_bounds = array<i64: 32, 32>}, {pipeline_mode = #tpu.pipeline_mode<synchronous>, transform_indices = @transform_4, window_bounds = array<i64: 1, 32>}, {transform_indices = @transform_5, window_bounds = array<i64: 4, 16, 32>}]} {
    %c0 = arith.constant 0 : index
    %c0_0 = arith.constant 0 : index
    %c0_1 = arith.constant 0 : index
    %0 = vector.load %arg1[%c0, %c0_0, %c0_1] : memref<4x16x32xf32, #tpu.memory_space<vmem>>, vector<4x16x32xf32>
    %1 = vector.shape_cast %0 : vector<4x16x32xf32> to vector<64x32xf32>
    %2 = tpu.iota {dimensions = array<i32: 1>} : vector<4x16x1xi32>
    %3 = vector.shape_cast %2 : vector<4x16x1xi32> to vector<64x1xi32>
    %c0_i32 = arith.constant 0 : i32
    %4 = vector.broadcast %c0_i32 : i32 to vector<64x1xi32>
    %5 = arith.cmpi eq, %3, %4 : vector<64x1xi32>
    %c1_i32 = arith.constant 1 : i32
    %6 = tpu.dynamic_rotate %1 by %c1_i32 dim 0 : vector<64x32xf32>, i32 -> vector<64x32xf32>
    %cst = arith.constant 0.000000e+00 : f32
    %7 = vector.shape_cast %5 : vector<64x1xi1> to vector<64x1xi1>
    %8 = vector.broadcast %7 : vector<64x1xi1> to vector<64x32xi1>
    %9 = vector.broadcast %cst : f32 to vector<64x32xf32>
    %10 = arith.select %8, %9, %6 : vector<64x32xi1>, vector<64x32xf32>
    %c15_i32 = arith.constant 15 : i32
    %11 = vector.broadcast %c15_i32 : i32 to vector<64x1xi32>
    %12 = arith.cmpi eq, %3, %11 : vector<64x1xi32>
    %c63_i32 = arith.constant 63 : i32
    %13 = tpu.dynamic_rotate %1 by %c63_i32 dim 0 : vector<64x32xf32>, i32 -> vector<64x32xf32>
    %cst_2 = arith.constant 0.000000e+00 : f32
    %14 = vector.shape_cast %12 : vector<64x1xi1> to vector<64x1xi1>
    %15 = vector.broadcast %14 : vector<64x1xi1> to vector<64x32xi1>
    %16 = vector.broadcast %cst_2 : f32 to vector<64x32xf32>
    %17 = arith.select %15, %16, %13 : vector<64x32xi1>, vector<64x32xf32>
    %18 = tpu.concatenate %10, %1, %17 in 1 : vector<64x32xf32>, vector<64x32xf32>, vector<64x32xf32> -> vector<64x96xf32>
    %c0_3 = arith.constant 0 : index
    %c0_4 = arith.constant 0 : index
    %19 = vector.load %arg2[%c0_3, %c0_4] : memref<96x96xf32, #tpu.memory_space<vmem>>, vector<96x96xf32>
    %cst_5 = arith.constant dense<0.000000e+00> : vector<64x96xf32>
    %20 = tpu.matmul %18, %19, %cst_5 {dimension_numbers = #tpu.dot_dimension_numbers<[1], [0], [0], [1], [0, 0, 1, 1], [], []>} : vector<64x96xf32>, vector<96x96xf32>, vector<64x96xf32> -> vector<64x96xf32>
    %c0_6 = arith.constant 0 : index
    %c0_7 = arith.constant 0 : index
    %21 = vector.load %arg3[%c0_6, %c0_7] : memref<1x96xf32, #tpu.memory_space<vmem>>, vector<1x96xf32>
    %22 = vector.broadcast %21 : vector<1x96xf32> to vector<64x96xf32>
    %23 = arith.addf %20, %22 : vector<64x96xf32>
    %24 = arith.negf %23 : vector<64x96xf32>
    %25 = math.exp %24 : vector<64x96xf32>
    %cst_8 = arith.constant 1.000000e+00 : f32
    %26 = vector.broadcast %cst_8 : f32 to vector<64x96xf32>
    %27 = arith.addf %26, %25 : vector<64x96xf32>
    %28 = arith.divf %26, %27 : vector<64x96xf32>
    %29 = arith.mulf %23, %28 : vector<64x96xf32>
    %30 = vector.shape_cast %29 : vector<64x96xf32> to vector<4x16x96xf32>
    %cst_9 = arith.constant 1.600000e+01 : f32
    %31 = math.sqrt %cst_9 : f32
    %cst_10 = arith.constant 1.000000e+00 : f32
    %32 = arith.divf %cst_10, %31 : f32
    %33 = vector.extract_strided_slice %30 {offsets = [0, 0, 0], sizes = [4, 16, 16], strides = [1, 1, 1]} : vector<4x16x96xf32> to vector<4x16x16xf32>
    %34 = vector.broadcast %32 : f32 to vector<4x16x16xf32>
    %35 = arith.mulf %33, %34 : vector<4x16x16xf32>
    %36 = vector.extract_strided_slice %30 {offsets = [0, 0, 16], sizes = [4, 16, 16], strides = [1, 1, 1]} : vector<4x16x96xf32> to vector<4x16x16xf32>
    %37 = vector.extract_strided_slice %30 {offsets = [0, 0, 32], sizes = [4, 16, 16], strides = [1, 1, 1]} : vector<4x16x96xf32> to vector<4x16x16xf32>
    "tpu.trace_start"() <{level = 10 : i32, message = "bld,bmd->blm"}> : () -> ()
    %cst_11 = arith.constant dense<0.000000e+00> : vector<4x16x16xf32>
    %38 = tpu.matmul %35, %36, %cst_11 {dimension_numbers = #tpu.dot_dimension_numbers<[2], [2], [1], [1], [0, 0, 0, 1, 1, 1], [0], [0]>} : vector<4x16x16xf32>, vector<4x16x16xf32>, vector<4x16x16xf32> -> vector<4x16x16xf32>
    "tpu.trace_stop"() : () -> ()
    %cst_12 = arith.constant dense<0xFF800000> : vector<4x16xf32>
    %39 = vector.multi_reduction <maximumf>, %38, %cst_12 [2] : vector<4x16x16xf32> to vector<4x16xf32>
    %40 = vector.shape_cast %39 : vector<4x16xf32> to vector<4x16x1xf32>
    %41 = vector.broadcast %40 : vector<4x16x1xf32> to vector<4x16x16xf32>
    %42 = arith.subf %38, %41 : vector<4x16x16xf32>
    %43 = math.exp %42 : vector<4x16x16xf32>
    %cst_13 = arith.constant dense<0.000000e+00> : vector<4x16xf32>
    %44 = vector.multi_reduction <add>, %43, %cst_13 [2] : vector<4x16x16xf32> to vector<4x16xf32>
    %45 = vector.shape_cast %44 : vector<4x16xf32> to vector<4x16x1xf32>
    "tpu.trace_start"() <{level = 10 : i32, message = "blm,bmd->bld"}> : () -> ()
    %cst_14 = arith.constant dense<0.000000e+00> : vector<4x16x16xf32>
    %46 = tpu.matmul %43, %37, %cst_14 {dimension_numbers = #tpu.dot_dimension_numbers<[2], [1], [1], [2], [0, 0, 0, 1, 1, 2], [0], [0]>} : vector<4x16x16xf32>, vector<4x16x16xf32>, vector<4x16x16xf32> -> vector<4x16x16xf32>
    "tpu.trace_stop"() : () -> ()
    %47 = tpu.reciprocal %45 {approx = true} : vector<4x16x1xf32> -> vector<4x16x1xf32>
    %48 = arith.mulf %45, %47 : vector<4x16x1xf32>
    %cst_15 = arith.constant 2.000000e+00 : f32
    %49 = vector.broadcast %cst_15 : f32 to vector<4x16x1xf32>
    %50 = arith.subf %49, %48 : vector<4x16x1xf32>
    %51 = arith.mulf %47, %50 : vector<4x16x1xf32>
    %52 = vector.broadcast %51 : vector<4x16x1xf32> to vector<4x16x16xf32>
    %53 = arith.mulf %46, %52 : vector<4x16x16xf32>
    %54 = vector.extract_strided_slice %30 {offsets = [0, 0, 48], sizes = [4, 16, 16], strides = [1, 1, 1]} : vector<4x16x96xf32> to vector<4x16x16xf32>
    %55 = vector.broadcast %32 : f32 to vector<4x16x16xf32>
    %56 = arith.mulf %54, %55 : vector<4x16x16xf32>
    %57 = vector.extract_strided_slice %30 {offsets = [0, 0, 64], sizes = [4, 16, 16], strides = [1, 1, 1]} : vector<4x16x96xf32> to vector<4x16x16xf32>
    %58 = vector.extract_strided_slice %30 {offsets = [0, 0, 80], sizes = [4, 16, 16], strides = [1, 1, 1]} : vector<4x16x96xf32> to vector<4x16x16xf32>
    "tpu.trace_start"() <{level = 10 : i32, message = "bld,bmd->blm"}> : () -> ()
    %cst_16 = arith.constant dense<0.000000e+00> : vector<4x16x16xf32>
    %59 = tpu.matmul %56, %57, %cst_16 {dimension_numbers = #tpu.dot_dimension_numbers<[2], [2], [1], [1], [0, 0, 0, 1, 1, 1], [0], [0]>} : vector<4x16x16xf32>, vector<4x16x16xf32>, vector<4x16x16xf32> -> vector<4x16x16xf32>
    "tpu.trace_stop"() : () -> ()
    %cst_17 = arith.constant dense<0xFF800000> : vector<4x16xf32>
    %60 = vector.multi_reduction <maximumf>, %59, %cst_17 [2] : vector<4x16x16xf32> to vector<4x16xf32>
    %61 = vector.shape_cast %60 : vector<4x16xf32> to vector<4x16x1xf32>
    %62 = vector.broadcast %61 : vector<4x16x1xf32> to vector<4x16x16xf32>
    %63 = arith.subf %59, %62 : vector<4x16x16xf32>
    %64 = math.exp %63 : vector<4x16x16xf32>
    %cst_18 = arith.constant dense<0.000000e+00> : vector<4x16xf32>
    %65 = vector.multi_reduction <add>, %64, %cst_18 [2] : vector<4x16x16xf32> to vector<4x16xf32>
    %66 = vector.shape_cast %65 : vector<4x16xf32> to vector<4x16x1xf32>
    "tpu.trace_start"() <{level = 10 : i32, message = "blm,bmd->bld"}> : () -> ()
    %cst_19 = arith.constant dense<0.000000e+00> : vector<4x16x16xf32>
    %67 = tpu.matmul %64, %58, %cst_19 {dimension_numbers = #tpu.dot_dimension_numbers<[2], [1], [1], [2], [0, 0, 0, 1, 1, 2], [0], [0]>} : vector<4x16x16xf32>, vector<4x16x16xf32>, vector<4x16x16xf32> -> vector<4x16x16xf32>
    "tpu.trace_stop"() : () -> ()
    %68 = tpu.reciprocal %66 {approx = true} : vector<4x16x1xf32> -> vector<4x16x1xf32>
    %69 = arith.mulf %66, %68 : vector<4x16x1xf32>
    %cst_20 = arith.constant 2.000000e+00 : f32
    %70 = vector.broadcast %cst_20 : f32 to vector<4x16x1xf32>
    %71 = arith.subf %70, %69 : vector<4x16x1xf32>
    %72 = arith.mulf %68, %71 : vector<4x16x1xf32>
    %73 = vector.broadcast %72 : vector<4x16x1xf32> to vector<4x16x16xf32>
    %74 = arith.mulf %67, %73 : vector<4x16x16xf32>
    %75 = tpu.concatenate %53, %74 in 2 : vector<4x16x16xf32>, vector<4x16x16xf32> -> vector<4x16x32xf32>
    %76 = vector.shape_cast %75 : vector<4x16x32xf32> to vector<64x32xf32>
    %c0_21 = arith.constant 0 : index
    %c0_22 = arith.constant 0 : index
    %77 = vector.load %arg4[%c0_21, %c0_22] : memref<32x32xf32, #tpu.memory_space<vmem>>, vector<32x32xf32>
    %cst_23 = arith.constant dense<0.000000e+00> : vector<64x32xf32>
    %78 = tpu.matmul %76, %77, %cst_23 {dimension_numbers = #tpu.dot_dimension_numbers<[1], [0], [0], [1], [0, 0, 1, 1], [], []>} : vector<64x32xf32>, vector<32x32xf32>, vector<64x32xf32> -> vector<64x32xf32>
    %c0_24 = arith.constant 0 : index
    %c0_25 = arith.constant 0 : index
    %79 = vector.load %arg5[%c0_24, %c0_25] : memref<1x32xf32, #tpu.memory_space<vmem>>, vector<1x32xf32>
    %80 = vector.broadcast %79 : vector<1x32xf32> to vector<64x32xf32>
    %81 = arith.addf %78, %80 : vector<64x32xf32>
    %82 = arith.negf %81 : vector<64x32xf32>
    %83 = math.exp %82 : vector<64x32xf32>
    %cst_26 = arith.constant 1.000000e+00 : f32
    %84 = vector.broadcast %cst_26 : f32 to vector<64x32xf32>
    %85 = arith.addf %84, %83 : vector<64x32xf32>
    %86 = arith.divf %84, %85 : vector<64x32xf32>
    %87 = arith.mulf %81, %86 : vector<64x32xf32>
    %cst_27 = arith.constant 2.000000e+00 : f32
    %88 = vector.broadcast %cst_27 : f32 to vector<64x32xf32>
    %89 = arith.mulf %1, %88 : vector<64x32xf32>
    %90 = arith.addf %89, %87 : vector<64x32xf32>
    %cst_28 = arith.constant dense<0.000000e+00> : vector<64xf32>
    %91 = vector.multi_reduction <add>, %90, %cst_28 [1] : vector<64x32xf32> to vector<64xf32>
    %92 = vector.shape_cast %91 : vector<64xf32> to vector<64x1xf32>
    %cst_29 = arith.constant 3.200000e+01 : f32
    %93 = vector.broadcast %cst_29 : f32 to vector<64x1xf32>
    %94 = arith.divf %92, %93 : vector<64x1xf32>
    %95 = vector.broadcast %94 : vector<64x1xf32> to vector<64x32xf32>
    %96 = arith.subf %90, %95 : vector<64x32xf32>
    %97 = arith.mulf %96, %96 : vector<64x32xf32>
    %cst_30 = arith.constant dense<0.000000e+00> : vector<64xf32>
    %98 = vector.multi_reduction <add>, %97, %cst_30 [1] : vector<64x32xf32> to vector<64xf32>
    %99 = vector.shape_cast %98 : vector<64xf32> to vector<64x1xf32>
    %cst_31 = arith.constant 3.200000e+01 : f32
    %100 = vector.broadcast %cst_31 : f32 to vector<64x1xf32>
    %101 = arith.divf %99, %100 : vector<64x1xf32>
    %102 = vector.broadcast %94 : vector<64x1xf32> to vector<64x32xf32>
    %103 = arith.subf %90, %102 : vector<64x32xf32>
    %cst_32 = arith.constant 9.99999974E-6 : f32
    %104 = vector.broadcast %cst_32 : f32 to vector<64x1xf32>
    %105 = arith.addf %101, %104 : vector<64x1xf32>
    %106 = math.rsqrt %105 : vector<64x1xf32>
    %107 = vector.broadcast %106 : vector<64x1xf32> to vector<64x32xf32>
    %108 = arith.mulf %103, %107 : vector<64x32xf32>
    %109 = vector.shape_cast %108 : vector<64x32xf32> to vector<4x16x32xf32>
    %c0_33 = arith.constant 0 : index
    %c0_34 = arith.constant 0 : index
    %c0_35 = arith.constant 0 : index
    %110 = vector.load %arg6[%c0_33, %c0_34, %c0_35] : memref<4x16x32xf32, #tpu.memory_space<vmem>>, vector<4x16x32xf32>
    tpu.vector_store %arg6[%c0_33, %c0_34, %c0_35], %109 {strides = array<i32>} : memref<4x16x32xf32, #tpu.memory_space<vmem>>, vector<4x16x32xf32>,
    return
  }
  func.func @transform_0(%arg0: i32) -> (i32, i32, i32) {
    %c0_i32 = arith.constant 0 : i32
    %c0_i32_0 = arith.constant 0 : i32
    %c0_i32_1 = arith.constant 0 : i32
    return %arg0, %c0_i32, %c0_i32_0 : i32, i32, i32
  }
  func.func @transform_1(%arg0: i32) -> (i32, i32) {
    %c0_i32 = arith.constant 0 : i32
    %c0_i32_0 = arith.constant 0 : i32
    %c0_i32_1 = arith.constant 0 : i32
    return %c0_i32, %c0_i32_0 : i32, i32
  }
  func.func @transform_2(%arg0: i32) -> (i32, i32) {
    %c0_i32 = arith.constant 0 : i32
    %c0_i32_0 = arith.constant 0 : i32
    %c0_i32_1 = arith.constant 0 : i32
    return %c0_i32, %c0_i32_0 : i32, i32
  }
  func.func @transform_3(%arg0: i32) -> (i32, i32) {
    %c0_i32 = arith.constant 0 : i32
    %c0_i32_0 = arith.constant 0 : i32
    %c0_i32_1 = arith.constant 0 : i32
    return %c0_i32, %c0_i32_0 : i32, i32
  }
  func.func @transform_4(%arg0: i32) -> (i32, i32) {
    %c0_i32 = arith.constant 0 : i32
    %c0_i32_0 = arith.constant 0 : i32
    %c0_i32_1 = arith.constant 0 : i32
    return %c0_i32, %c0_i32_0 : i32, i32
  }
  func.func @transform_5(%arg0: i32) -> (i32, i32, i32) {
    %c0_i32 = arith.constant 0 : i32
    %c0_i32_0 = arith.constant 0 : i32
    %c0_i32_1 = arith.constant 0 : i32
    return %arg0, %c0_i32, %c0_i32_0 : i32, i32, i32
  }
}

</mosaic_0001>

<bundles_post_ra>
// kernel: tpu_custom_call.1
= control target key start
LH: loop header
LB: loop body
LE: loop exit
PB: predicated region body
PF: predicated region fallthrough
CT: control target
= control target key end

     0   :  { %10 = vsyncpa [#allocation3], 0  ;;  %s3524_s0 = inlined_call_operand.hbm [shape: f32[8,16,32], index: 0, kind: input, shape index: {}]   ;;  %s3525_s1 = inlined_call_operand.hbm [shape: f32[96,96], index: 1, kind: input, shape index: {}]   ;;  %s3526_s2 = inlined_call_operand.vmem [shape: f32[1,96], index: 2, kind: input, shape index: {}]   ;;  %s3527_s3 = inlined_call_operand.hbm [shape: f32[32,32], index: 3, kind: input, shape index: {}]   ;;  %s3528_s4 = inlined_call_operand.vmem [shape: f32[1,32], index: 4, kind: input, shape index: {}]   ;;  %s3529_s5 = inlined_call_operand.hbm [shape: f32[8,16,32], index: 5, kind: output, shape index: {}]  }
   0x1   :  { %12 = vsyncpa [#allocation3 + $0x1], 0 }
   0x2   :  { %13 = vsyncpa [#allocation6], 0 }
   0x3   :  { %14 = vsyncpa [#allocation4], 0 }
   0x4   :  { %16 = vsyncpa [#allocation4 + $0x1], 0  ;;  %s2681_s18 = smov 0   ;;  %s2683_s19 = smov 0  }
   0x5   :  { %s2685_s20 = smov 0   ;;  %s2687_s21 = smov 0  }
   0x6 LB: > { %s2702_s22 = sadd.s32 4294967295, %s2635_s21   ;;  %s2092_s23 = sadd.s32 4294967294, %s2635_s21   ;;  %s2635_s21 = sphi %s2687_s21, %s3545_s21   ;;  %s2631_s20 = sphi %s2685_s20, %s3544_s20   ;;  %s2627_s19 = sphi %s2683_s19, %s3543_s19   ;;  %s2623_s18 = sphi %s2681_s18, %s3542_s18  }
   0x7   : > { %p42_p0 = scmp.ne.s32.totalorder %s2627_s19, %s2623_s18  ;;  %p43_p1 = scmp.eq.s32.totalorder %s2702_s22, 0 }
   0x8   : > { %p150_p2 = scmp.eq.s32.totalorder %s2702_s22, 1  ;;  %p156_p3 = scmp.eq.s32.totalorder %s2092_s23, 1 }
   0x9   : > { %p2711_p4 = por %p43_p1, %p42_p0  ;;  %p2093_p5 = scmp.ge.s32.totalorder %s2635_s21, 1 }
   0xa   : > { %p2716_p6 = por %p156_p3, %p42_p0  ;;  %p163_p7 = scmp.lt.s32.totalorder %s2635_s21, 3 }
   0xb   : > { %s174_s28 = sshll.u32 %s3525_s1, 4  ;;  %s2637_s30 = smov [#allocation5]   ;;  %s175_s28 = int_to_ptr.hbm [resolvable:$true] %s174_s28 }
   0xc   : > { %p2724_p8 = pnand %p2093_p5, %p163_p7  ;;  %s176_s6 = sshll.u32 %s2637_s30, 4  ;;  %s177_s6 = int_to_ptr.vmem [resolvable:$true] %s176_s6 }
   0xd   : > { %s191_s9 = sshll.u32 %s3527_s3, 4  ;;  %s3530_s10 = smov 128   ;;  %s192_s9 = int_to_ptr.hbm [resolvable:$true] %s191_s9 }
   0xe   : > { %p2212_p9 = pneg %p2724_p8  ;;  %s2639_s11 = smov 8  }
   0xf   : > { %s2640_s12 = smov [#allocation7]   ;;  %s2743_s14 = sadd.s32 1, %s2635_s21  }
  0x10   : > { %p2213_p10 = pnand %p2212_p9, %p43_p1  ;;  %s193_s13 = sshll.u32 %s2640_s12, 4  ;;  %s194_s13 = int_to_ptr.vmem [resolvable:$true] %s193_s13 }
  0x11   : > { %s29_s15 = sadd.s32 1, %s2631_s20  ;;  %s26_s16 = ssub.s32 %s2635_s21, %s2743_s14 }
  0x12   : > { %2215 = dma.hbm_to_vmem [thread:$0]  (!%p2213_p10), %s175_s28, 1536, %s177_s6, [#allocation6], %s3530_s10, %s3530_s10, %s2639_s11  }
  0x13   : > { %2218 = dma.hbm_to_vmem [thread:$0]  (!%p2213_p10), %s192_s9, 512, %s194_s13, [#allocation6], %s3530_s10, %s3530_s10, %s2639_s11  }
  0x14   : > { %p36_p12 = scmp.ne.s32.totalorder %s2631_s20, %s2627_s19  ;;  %p27_p13 = scmp.eq.s32.totalorder %s26_s16, 0 }
  0x15   : > { %p37_p0 = scmp.eq.s32.totalorder %s2635_s21, 0  ;;  %p2229_p5 = scmp.lt.s32.totalorder %s2635_s21, 2 }
  0x16   : > { %p2753_p3 = por %p150_p2, %p36_p12  ;;  %s210_s26 = sand.u32 1, %s2631_s20  }
  0x17   : > { %s2759_s23 = scalar_select %p27_p13, %s2631_s20, %s29_s15  }
  0x18   : > { %p38_p7 = por %p37_p0, %p36_p12  ;;  %s2097_s27 = sshll.u32 %s210_s26, 6 }
  0x19   : > { %s2193_s28 = sshll.u32 %s2635_s21, 6  ;;  %s214_s8 = scalar_lea.vmem [#allocation2], %s2097_s27 }
  0x1a   : > { %s220_s7 = scalar_lea.hbm %s3524_s0, %s2193_s28  ;;  %s223_s9 = sshll.u32 %s214_s8, 4  ;;  %s224_s9 = int_to_ptr.vmem [resolvable:$true] %s223_s9 }
  0x1b   : > { %s221_s12 = sshll.u32 %s220_s7, 4  ;;  %p2766_p2 = pnand %p2229_p5, %p38_p7  ;;  %s222_s12 = int_to_ptr.hbm [resolvable:$true] %s221_s12 }
  0x1c   : > { %s211_s15 = scalar_lea.sflag [#allocation3], %s210_s26  ;;  %s2535_s16 = sshra.s32 %s222_s12, 4  ;;  %s2536_s16 = int_to_ptr.hbm [resolvable:$true] %s2535_s16 }
  0x1d   : > { %s2537_s10 = scalar_lea.hbm %s2536_s16, 64  ;;  %p2539_p10 = pneg %p2766_p2 }
  0x1e   : > { %p2538_p9 = scmp.ne.s32.totalorder %s2536_s16, %s2537_s10  ;;  %s2542_s30 = scalar_lea.hbm %s3524_s0, 128 }
  0x1f   : > { %p2543_p0 = scmp.lt.s32.totalorder %s2536_s16, %s3524_s0  ;;  %p2544_p5 = scmp.lt.s32.totalorder %s2542_s30, %s2537_s10 }
  0x20   : > { %p2540_p12 = pnand %p2539_p10, %p2538_p9 }
  0x21   : > { %p2545_p7 = por %p2544_p5, %p2543_p0 }
  0x22   : > { %p2541_p13 = pneg %p2540_p12 }
  0x24   : > { %p2546_p11 = pnand %p2545_p7, %p2541_p13 }
  0x26   : > { %2549 = shalt.err (!%p2546_p11)
}
  0x27   : > { %s3536_s26 = smov 128   ;;  %235 = sbr.rel (%p2724_p8) target bundleno = 1863 (0x747), region = 40 }
  0x28   : > { %2222 = dma.hbm_to_vmem [thread:$0]  (!%p2766_p2), %s222_s12, 1024, %s224_s9, %s211_s15, %s3536_s26, %s3536_s26, %s2639_s11  }
  0x29   : > { %s2786_s8 = sand.u32 (!%p2724_p8), 1, %s2627_s19  }
  0x2a   : > { %s2102_s10 = sshll.u32 (!%p2724_p8), %s2786_s8, 6  ;;  %s238_s16 = scalar_lea.sflag (!%p2724_p8), [#allocation3], %s2786_s8 }
  0x2b   : > { %s2792_s28 = scalar_lea.vmem (!%p2724_p8), [#allocation2], %s2102_s10 }
  0x2c   : > { %2610 = dma.done.wait (%p2711_p4), %s238_s16, 1024  }
  0x2d   : > { %2612 = vsyncadd (%p2711_p4), %s238_s16, 4294966272 }
  0x2e   : > { %2614 = dma.done.wait (%p43_p1), [#allocation6], 2048  }
  0x2f   : > { %2616 = vsyncadd (%p43_p1), [#allocation6], 4294965248  ;;  %v289_v0 = vlaneseq  ;;  %v2806_v3 = vld [vmem:[%s2792_s28] sm:$0xff]  ;;  %v2809_v4 = vld [vmem:[%s2792_s28 + $0x8] sm:$0xff]  ;;  %s2641_s24 = smov 32   ;;  %s2642_s29 = smov 64  }
  0x30   : > { %v2812_v5 = vld [vmem:[%s2792_s28 + $0x10] sm:$0xff]  ;;  %362 = vrot.lane.b32.xlu0 %v2806_v3, %s2641_s24  ;;  %364 = vrot.lane.b32.xlu1 %v2809_v4, %s2641_s24  ;;  %v326_v6 = vrot.slane %v2809_v4, 1  ;;  %v325_v7 = vrot.slane %v2806_v3, 1  ;;  %v2823_v9 = vld [vmem:[%s2792_s28 + $0x18] sm:$0xff]  ;;  %v445_v20 = vld [vmem:[#allocation5 + $0x48] sm:$0xff]  ;;  %v294_v43 = vrot.slane %v2806_v3, 7 }
  0x31   : > { %v2802_v1 = vshrl.u32 %v289_v0, 7  ;;  %v327_v8 = vrot.slane %v2812_v5, 1  ;;  %366 = vrot.lane.b32.xlu2 %v2812_v5, %s2641_s24  ;;  %v2830_v11 = vld [vmem:[%s2792_s28 + $0x20] sm:$0xff]  ;;  %v328_v12 = vrot.slane %v2823_v9, 1  ;;  %v447_v17 = vld [vmem:[#allocation5 + $0x58] sm:$0xff]  ;;  %v446_v18 = vld [vmem:[#allocation5 + $0x50] sm:$0xff] }
  0x32   : > { %v329_v15 = vrot.slane %v2830_v11, 1  ;;  %481 = vmatpush.msra.mxu0 %v447_v17  ;;  %v444_v21 = vld [vmem:[#allocation5 + $0x40] sm:$0xff]  ;;  %v2846_v23 = vld [vmem:[%s2792_s28 + $0x28] sm:$0xff]  ;;  %v2849_v24 = vld [vmem:[%s2792_s28 + $0x30] sm:$0xff]  ;;  %vm418_vm4 = vcmask 261120   ;;  %vm427_vm5 = vcmask 523264  }
  0x33   : > { %v291_v2 = vadd.s32 8, %v2802_v1  ;;  %vm333_vm0 = vcmp.lt.s32.totalorder %v2802_v1, 7  ;;  %v443_v25 = vld [vmem:[#allocation5 + $0x38] sm:$0xff]  ;;  %v442_v26 = vld [vmem:[#allocation5 + $0x30] sm:$0xff]  ;;  %v330_v27 = vrot.slane %v2846_v23, 1  ;;  %v331_v28 = vrot.slane %v2849_v24, 1 }
  0x34   : > { %v339_v10 = vsel %vm333_vm0, %v326_v6, %v327_v8  ;;  %v340_v13 = vsel %vm333_vm0, %v325_v7, %v326_v6  ;;  %v338_v16 = vsel %vm333_vm0, %v327_v8, %v328_v12  ;;  %v337_v19 = vsel %vm333_vm0, %v328_v12, %v329_v15  ;;  %482 = vmatpush.msra.mxu0 %v446_v18  ;;  %v441_v29 = vld [vmem:[#allocation5 + $0x28] sm:$0xff]  ;;  %v2863_v32 = vld [vmem:[%s2792_s28 + $0x38] sm:$0xff]  ;;  %v440_v38 = vld [vmem:[#allocation5 + $0x20] sm:$0xff]  ;;  %s2643_s12 = smov 112   ;;  %s2644_s13 = smov 96  }
  0x35   : > { %vm324_vm1 = vcmp.eq.s32.totalorder %v291_v2, 15  ;;  %v335_v30 = vsel %vm333_vm0, %v330_v27, %v331_v28  ;;  %v336_v31 = vsel %vm333_vm0, %v329_v15, %v330_v27  ;;  %v332_v34 = vrot.slane %v2863_v32, 1  ;;  %v439_v39 = vld [vmem:[#allocation5 + $0x18] sm:$0xff]  ;;  %v438_v40 = vld [vmem:[#allocation5 + $0x10] sm:$0xff]  ;;  %v437_v41 = vld [vmem:[#allocation5 + $0x8] sm:$0xff]  ;;  %s2645_s15 = smov 80  }
  0x36   : > { %v347_v14 = vsel %vm324_vm1, 0.0, %v339_v10  ;;  %v349_v22 = vsel %vm324_vm1, 0.0, %v337_v19  ;;  %483 = vmatpush.msra.mxu0 %v445_v20  ;;  %v351_v33 = vsel %vm324_vm1, 0.0, %v335_v30  ;;  %v436_v42 = vld [vmem:[#allocation5] sm:$0xff]  ;;  %v301_v44 = vrot.slane %v2863_v32, 7  ;;  %s2646_s27 = smov 48  }
  0x37   : > { %v334_v35 = vsel %vm333_vm0, %v331_v28, %v332_v34  ;;  %v341_v36 = vsel %vm333_vm0, %v332_v34, %v325_v7  ;;  %vm302_vm2 = vcmp.lt.s32.totalorder %v2802_v1, 1  ;;  %vm292_vm3 = vcmp.eq.s32.totalorder %v2802_v1, 0  ;;  %s2647_s30 = smov 16   ;;  %s3458_s26 = scalar_lea.vmem [#allocation8], %s2102_s10 }
  0x38   : > { %394 = vrot.lane.b32.xlu0 %v340_v13, %s2642_s29  ;;  %396 = vrot.lane.b32.xlu1 %v347_v14, %s2642_s29  ;;  %v353_v37 = vsel %vm324_vm1, 0.0, %v341_v36  ;;  %v310_v46 = vsel %vm302_vm2, %v301_v44, %v294_v43  ;;  %v295_v49 = vrot.slane %v2809_v4, 7  ;;  %vm452_vm6 = vcmask 785408   ;;  %s2195_s10 = sshll.u32 %s2702_s22, 6  ;;  %s1997_s22 = sshll.u32 %s3458_s26, 4  ;;  %s1998_s22 = int_to_ptr.vmem [resolvable:$true] %s1997_s22 }
  0x39   : > { %398 = vrot.lane.b32.xlu2 %v338_v16, %s2642_s29  ;;  %484 = vmatpush.msra.mxu0 %v444_v21  ;;  %v315_v48 = vsel %vm292_vm3, 0.0, %v310_v46  ;;  %v296_v55 = vrot.slane %v2812_v5, 7  ;;  %v297_v61 = vrot.slane %v2823_v9, 7  ;;  %v298_v4 = vrot.slane %v2830_v11, 7  ;;  %s1984_s11 = scalar_lea.sflag [#allocation4], %s2786_s8 }
  0x3a   : > { %v309_v53 = vsel %vm302_vm2, %v294_v43, %v295_v49  ;;  %v299_v14 = vrot.slane %v2846_v23, 7  ;;  %v300_v17 = vrot.slane %v2849_v24, 7 }
  0x3b   : > { %485 = vmatpush.msra.mxu0 %v443_v25  ;;  %v308_v58 = vsel %vm302_vm2, %v295_v49, %v296_v55  ;;  %v307_v2 = vsel %vm302_vm2, %v296_v55, %v297_v61  ;;  %v306_v7 = vsel %vm302_vm2, %v297_v61, %v298_v4 }
  0x3c   : > { %v317_v60 = vsel %vm292_vm3, 0.0, %v308_v58  ;;  %v305_v15 = vsel %vm302_vm2, %v298_v4, %v299_v14  ;;  %v304_v20 = vsel %vm302_vm2, %v299_v14, %v300_v17  ;;  %v303_v27 = vsel %vm302_vm2, %v300_v17, %v301_v44 }
  0x3d   : > { %486 = vmatpush.msra.mxu0 %v442_v26 }
  0x3f   : > { %487 = vmatpush.msra.mxu0 %v441_v29 }
  0x40   : > { %368 = vrot.lane.b32.xlu0 %v2823_v9, %s2641_s24  ;;  %400 = vrot.lane.b32.xlu1 %v349_v22, %s2642_s29  ;;  %v319_v9 = vsel %vm292_vm3, 0.0, %v306_v7  ;;  %v321_v22 = vsel %vm292_vm3, 0.0, %v304_v20 }
  0x41   : > { %370 = vrot.lane.b32.xlu2 %v2830_v11, %s2641_s24  ;;  %488 = vmatpush.msra.mxu0 %v440_v38 }
  0x43   : > { %489 = vmatpush.msra.mxu0 %v439_v39 }
  0x45   : > { %490 = vmatpush.msra.mxu0 %v438_v40 }
  0x47   : > { %491 = vmatpush.msra.mxu0 %v437_v41 }
  0x48   : > { %402 = vrot.lane.b32.xlu0 %v336_v31, %s2642_s29  ;;  %372 = vrot.lane.b32.xlu1 %v2846_v23, %s2641_s24 }
  0x49   : > { %404 = vrot.lane.b32.xlu2 %v351_v33, %s2642_s29  ;;  %492 = vmatpush.msra.mxu0 %v436_v42 }
  0x50   : > { %374 = vrot.lane.b32.xlu0 %v2849_v24, %s2641_s24  ;;  %406 = vrot.lane.b32.xlu1 %v334_v35, %s2642_s29 }
  0x51   : > { %376 = vrot.lane.b32.xlu2 %v2863_v32, %s2641_s24  ;;  %v2943_v32 = vld [vmem:[%s3526_s2] ss:$0 sm:$0xff]  ;;  %s1996_s24 = scalar_lea.hbm %s3529_s5, %s2195_s10 }
  0x58   : > { %408 = vrot.lane.b32.xlu0 %v353_v37, %s2642_s29 }
  0x8b   : > { %v367_v54 = vpop.permute.xlu2 %366 }
  0x8c   : > { %v421_v62 = vsel %vm418_vm4, %v317_v60, %v367_v54 }
  0x93   : > { %v399_v63 = vpop.permute.xlu2 %398 }
  0x94   : > { %v430_v0 = vsel %vm427_vm5, %v421_v62, %v399_v63 }
  0x9b   : > { %v371_v10 = vpop.permute.xlu2 %370 }
  0x9c   : > { %v423_v12 = vsel %vm418_vm4, %v319_v9, %v371_v10 }
  0xa2   : > { %v363_v45 = vpop.permute.xlu0 %362  ;;  %v365_v47 = vpop.permute.xlu1 %364 }
  0xa3   : > { %v419_v50 = vsel %vm418_vm4, %v315_v48, %v363_v45  ;;  %v420_v56 = vsel %vm418_vm4, %v309_v53, %v365_v47  ;;  %v405_v19 = vpop.permute.xlu2 %404 }
  0xaa   : > { %v395_v51 = vpop.permute.xlu0 %394  ;;  %v397_v57 = vpop.permute.xlu1 %396 }
  0xab   : > { %v428_v52 = vsel %vm427_vm5, %v419_v50, %v395_v51  ;;  %v429_v59 = vsel %vm427_vm5, %v420_v56, %v397_v57  ;;  %v377_v28 = vpop.permute.xlu2 %376 }
  0xac   : > { %2106 = vmatmul.msk.f32.vlgmr.msra.gmra.mxu0 %vm452_vm6, %v428_v52  ;;  %v426_v29 = vsel %vm418_vm4, %v303_v27, %v377_v28 }
  0xb2   : > { %v369_v3 = vpop.permute.xlu0 %368  ;;  %v401_v6 = vpop.permute.xlu1 %400 }
  0xb3   : > { %v422_v5 = vsel %vm418_vm4, %v307_v2, %v369_v3 }
  0xb4   : > { %2107 = vmatmul.msk.f32.gmra.mxu0 %vm452_vm6, %v429_v59  ;;  %v431_v8 = vsel %vm427_vm5, %v422_v5, %v401_v6 }
  0xba   : > { %v403_v13 = vpop.permute.xlu0 %402  ;;  %v373_v16 = vpop.permute.xlu1 %372 }
  0xbb   : > { %v432_v11 = vsel %vm427_vm5, %v423_v12, %v403_v13  ;;  %v424_v18 = vsel %vm418_vm4, %v305_v15, %v373_v16 }
  0xbc   : > { %2108 = vmatmul.msk.f32.gmra.mxu0 %vm452_vm6, %v430_v0  ;;  %v433_v21 = vsel %vm427_vm5, %v424_v18, %v405_v19 }
  0xc2   : > { %v375_v23 = vpop.permute.xlu0 %374  ;;  %v407_v26 = vpop.permute.xlu1 %406 }
  0xc3   : > { %v425_v25 = vsel %vm418_vm4, %v321_v22, %v375_v23 }
  0xc4   : > { %2109 = vmatmul.msk.f32.gmra.mxu0 %vm452_vm6, %v431_v8  ;;  %v434_v24 = vsel %vm427_vm5, %v425_v25, %v407_v26 }
  0xca   : > { %v409_v30 = vpop.permute.xlu0 %408 }
  0xcb   : > { %v435_v31 = vsel %vm427_vm5, %v426_v29, %v409_v30 }
  0xcc   : > { %2110 = vmatmul.msk.f32.gmra.mxu0 %vm452_vm6, %v432_v11 }
  0xd4   : > { %2111 = vmatmul.msk.f32.gmra.mxu0 %vm452_vm6, %v433_v21 }
  0xdc   : > { %2112 = vmatmul.msk.f32.gmra.mxu0 %vm452_vm6, %v434_v24 }
  0xe4   : > { %2113 = vmatmul.msk.f32.gmra.mxu0 %vm452_vm6, %v435_v31 }
 0x129   : > { %v494_v33 = vpop.f32.mrf.mxu0 }
 0x12a   : > { %v2946_v34 = vadd.f32 %v2943_v32, %v494_v33 }
 0x12c   : > { %v2114_v1 = vmul.f32 -1.442695, %v2946_v34 }
 0x12e   : > { %2321 = vpow2.f32 %v2114_v1 }
 0x131   : > { %v497_v35 = vpop.f32.mrf.mxu0 }
 0x132   : > { %v498_v36 = vadd.f32 %v2943_v32, %v497_v35 }
 0x134   : > { %v2115_v37 = vmul.f32 -1.442695, %v498_v36  ;;  %v2322_v38 = vpop.eup %2321 }
 0x135   : > { %v2950_v39 = vadd.f32 1.0, %v2322_v38 }
 0x136   : > { %2323 = vpow2.f32 %v2115_v37 }
 0x137   : > { %2325 = vrcp.f32 %v2950_v39  ;;  %vm555_vm13 = vweird.f32 %v2950_v39  ;;  %v561_v16 = vand.u32 2147483648, %v2950_v39  ;;  %v559_v19 = vand.u32 2147483647, %v2950_v39 }
 0x139   : > { %v500_v40 = vpop.f32.mrf.mxu0  ;;  %v562_v28 = vor.u32 1.1754944e-38, %v561_v16  ;;  %vm560_vm2 = vcmp.eq.f32.partialorder %v559_v19, 8.507059e+37 }
 0x13a   : > { %v2953_v41 = vadd.f32 %v2943_v32, %v500_v40 }
 0x13c   : > { %v2324_v42 = vpop.eup %2323  ;;  %v2116_v43 = vmul.f32 -1.442695, %v2953_v41 }
 0x13d   : > { %v543_v44 = vadd.f32 1.0, %v2324_v42  ;;  %v2957_v46 = vpop.eup %2325 }
 0x13e   : > { %2327 = vpow2.f32 %v2116_v43  ;;  %v551_v51 = vmul.f32 %v2957_v46, %v2950_v39  ;;  %vm556_vm11 = vweird.f32 %v2957_v46 }
 0x13f   : > { %2329 = vrcp.f32 %v543_v44  ;;  %v576_v56 = vand.u32 2147483648, %v543_v44  ;;  %v574_v59 = vand.u32 2147483647, %v543_v44  ;;  %vm570_vm8 = vweird.f32 %v543_v44  ;;  %vm2981_vm14 = vmor %vm555_vm13, %vm556_vm11 }
 0x140   : > { %v552_v55 = vsub.f32 1.0, %v551_v51 }
 0x141   : > { %v503_v45 = vpop.f32.mrf.mxu0  ;;  %v577_v3 = vor.u32 1.1754944e-38, %v576_v56  ;;  %vm575_vm10 = vcmp.eq.f32.partialorder %v574_v59, 8.507059e+37 }
 0x142   : > { %v2960_v47 = vadd.f32 %v2943_v32, %v503_v45  ;;  %v553_v2 = vmul.f32 %v2957_v46, %v552_v55 }
 0x144   : > { %v2328_v48 = vpop.eup %2327  ;;  %v2117_v49 = vmul.f32 -1.442695, %v2960_v47  ;;  %v554_v10 = vadd.f32 %v2957_v46, %v553_v2 }
 0x145   : > { %v2330_v50 = vpop.eup %2329  ;;  %v544_v52 = vadd.f32 1.0, %v2328_v48 }
 0x146   : > { %v566_v53 = vmul.f32 %v2330_v50, %v543_v44  ;;  %2331 = vpow2.f32 %v2117_v49  ;;  %vm571_vm7 = vweird.f32 %v2330_v50  ;;  %v558_v23 = vsel %vm2981_vm14, %v2957_v46, %v554_v10 }
 0x147   : > { %2333 = vrcp.f32 %v544_v52  ;;  %vm572_vm9 = vmor %vm570_vm8, %vm571_vm7  ;;  %v591_v12 = vand.u32 2147483648, %v544_v52  ;;  %v589_v11 = vand.u32 2147483647, %v544_v52  ;;  %vm585_vm15 = vweird.f32 %v544_v52 }
 0x148   : > { %v567_v54 = vsub.f32 1.0, %v566_v53  ;;  %v563_v33 = vsel %vm560_vm2, %v562_v28, %v558_v23 }
 0x149   : > { %v506_v57 = vpop.f32.mrf.mxu0  ;;  %v592_v25 = vor.u32 1.1754944e-38, %v591_v12  ;;  %vm590_vm1 = vcmp.eq.f32.partialorder %v589_v11, 8.507059e+37  ;;  %v3001_v43 = vmul.f32 %v563_v33, %v2946_v34 }
 0x14a   : > { %v568_v58 = vmul.f32 %v2330_v50, %v567_v54  ;;  %v2966_v60 = vadd.f32 %v2943_v32, %v506_v57 }
 0x14c   : > { %v2332_v61 = vpop.eup %2331  ;;  %v569_v62 = vadd.f32 %v2330_v50, %v568_v58  ;;  %v2118_v63 = vmul.f32 -1.442695, %v2966_v60 }
 0x14d   : > { %v2334_v0 = vpop.eup %2333  ;;  %v545_v4 = vadd.f32 1.0, %v2332_v61 }
 0x14e   : > { %v573_v5 = vsel %vm572_vm9, %v2330_v50, %v569_v62  ;;  %v581_v6 = vmul.f32 %v2334_v0, %v544_v52  ;;  %2335 = vpow2.f32 %v2118_v63  ;;  %vm586_vm12 = vweird.f32 %v2334_v0 }
 0x14f   : > { %v578_v7 = vsel %vm575_vm10, %v577_v3, %v573_v5  ;;  %2337 = vrcp.f32 %v545_v4  ;;  %vm587_vm0 = vmor %vm585_vm15, %vm586_vm12  ;;  %v606_v1 = vand.u32 2147483648, %v545_v4  ;;  %v604_v37 = vand.u32 2147483647, %v545_v4 }
 0x150   : > { %v2970_v8 = vmul.f32 %v578_v7, %v498_v36  ;;  %v582_v9 = vsub.f32 1.0, %v581_v6  ;;  %vm600_vm5 = vweird.f32 %v545_v4 }
 0x151   : > { %v509_v13 = vpop.f32.mrf.mxu0  ;;  %v607_v44 = vor.u32 1.1754944e-38, %v606_v1  ;;  %vm605_vm7 = vcmp.eq.f32.partialorder %v604_v37, 8.507059e+37 }
 0x152   : > { %v583_v14 = vmul.f32 %v2334_v0, %v582_v9  ;;  %v2975_v15 = vadd.f32 %v2943_v32, %v509_v13  ;;  %690 = vrot.lane.b32.xlu0 %v2970_v8, %s2643_s12 }
 0x154   : > { %v2336_v17 = vpop.eup %2335  ;;  %v584_v20 = vadd.f32 %v2334_v0, %v583_v14  ;;  %v2119_v21 = vmul.f32 -1.442695, %v2975_v15 }
 0x155   : > { %v2338_v22 = vpop.eup %2337  ;;  %v546_v26 = vadd.f32 1.0, %v2336_v17 }
 0x156   : > { %v588_v24 = vsel %vm587_vm0, %v2334_v0, %v584_v20  ;;  %v596_v27 = vmul.f32 %v2338_v22, %v545_v4  ;;  %2339 = vpow2.f32 %v2119_v21  ;;  %vm601_vm3 = vweird.f32 %v2338_v22 }
 0x157   : > { %v593_v29 = vsel %vm590_vm1, %v592_v25, %v588_v24  ;;  %2341 = vrcp.f32 %v546_v26  ;;  %vm602_vm6 = vmor %vm600_vm5, %vm601_vm3  ;;  %vm615_vm8 = vweird.f32 %v546_v26  ;;  %v621_v50 = vand.u32 2147483648, %v546_v26 }
 0x158   : > { %v2992_v30 = vmul.f32 %v593_v29, %v2953_v41  ;;  %v597_v31 = vsub.f32 1.0, %v596_v27  ;;  %v619_v53 = vand.u32 2147483647, %v546_v26 }
 0x159   : > { %v512_v35 = vpop.f32.mrf.mxu0  ;;  %v622_v56 = vor.u32 1.1754944e-38, %v621_v50 }
 0x15a   : > { %v598_v36 = vmul.f32 %v2338_v22, %v597_v31  ;;  %v2995_v38 = vadd.f32 %v2943_v32, %v512_v35  ;;  %728 = vrot.lane.b32.xlu2 %v2992_v30, %s2643_s12  ;;  %vm620_vm11 = vcmp.eq.f32.partialorder %v619_v53, 8.507059e+37 }
 0x15c   : > { %v2340_v39 = vpop.eup %2339  ;;  %v599_v40 = vadd.f32 %v2338_v22, %v598_v36  ;;  %v2120_v42 = vmul.f32 -1.442695, %v2995_v38 }
 0x15d   : > { %v2342_v41 = vpop.eup %2341  ;;  %v547_v45 = vadd.f32 1.0, %v2340_v39 }
 0x15e   : > { %v603_v46 = vsel %vm602_vm6, %v2338_v22, %v599_v40  ;;  %v611_v48 = vmul.f32 %v2342_v41, %v546_v26  ;;  %2343 = vpow2.f32 %v2120_v42  ;;  %vm616_vm9 = vweird.f32 %v2342_v41 }
 0x15f   : > { %v608_v49 = vsel %vm605_vm7, %v607_v44, %v603_v46  ;;  %2345 = vrcp.f32 %v547_v45  ;;  %vm617_vm10 = vmor %vm615_vm8, %vm616_vm9  ;;  %vm630_vm12 = vweird.f32 %v547_v45  ;;  %v636_v2 = vand.u32 2147483648, %v547_v45 }
 0x160   : > { %v3004_v51 = vmul.f32 %v608_v49, %v2960_v47  ;;  %v612_v52 = vsub.f32 1.0, %v611_v48  ;;  %v634_v5 = vand.u32 2147483647, %v547_v45  ;;  %v680_v40 = vmul.f32 0.25, %v2992_v30 }
 0x161   : > { %v515_v54 = vpop.f32.mrf.mxu0  ;;  %v637_v7 = vor.u32 1.1754944e-38, %v636_v2  ;;  %vm692_vm9 = vcmask 130048   ;;  %v3076_v46 = vmul.f32 0.25, %v2970_v8 }
 0x162   : > { %v613_v34 = vmul.f32 %v2342_v41, %v612_v52  ;;  %v3007_v55 = vadd.f32 %v2943_v32, %v515_v54  ;;  %730 = vrot.lane.b32.xlu1 %v3004_v51, %s2643_s12  ;;  %688 = vrot.lane.b32.xlu2 %v3001_v43, %s2643_s12  ;;  %v3015_v47 = vpack.i.bf16 %v2992_v30, %v3004_v51  ;;  %vm635_vm15 = vcmp.eq.f32.partialorder %v634_v5, 8.507059e+37 }
 0x164   : > { %v2344_v57 = vpop.eup %2343  ;;  %v614_v58 = vadd.f32 %v2342_v41, %v613_v34  ;;  %v2121_v59 = vmul.f32 -1.442695, %v3007_v55  ;;  %v681_v34 = vmul.f32 0.25, %v3004_v51 }
 0x165   : > { %v2346_v61 = vpop.eup %2345  ;;  %v548_v32 = vadd.f32 1.0, %v2344_v57 }
 0x166   : > { %v618_v62 = vsel %vm617_vm10, %v2342_v41, %v614_v58  ;;  %v626_v63 = vmul.f32 %v2346_v61, %v547_v45  ;;  %2347 = vpow2.f32 %v2121_v59  ;;  %vm631_vm13 = vweird.f32 %v2346_v61 }
 0x167   : > { %v623_v0 = vsel %vm620_vm11, %v622_v56, %v618_v62  ;;  %2349 = vrcp.f32 %v548_v32  ;;  %vm632_vm14 = vmor %vm630_vm12, %vm631_vm13  ;;  %vm645_vm0 = vweird.f32 %v548_v32  ;;  %v649_v19 = vand.u32 2147483647, %v548_v32 }
 0x168   : > { %v3019_v3 = vmul.f32 %v623_v0, %v2966_v60  ;;  %v627_v4 = vsub.f32 1.0, %v626_v63  ;;  %v651_v60 = vand.u32 2147483648, %v548_v32  ;;  %v3071_v45 = vmul.f32 0.25, %v3001_v43 }
 0x169   : > { %vm650_vm3 = vcmp.eq.f32.partialorder %v649_v19, 8.507059e+37 }
 0x16a   : > { %v628_v6 = vmul.f32 %v2346_v61, %v627_v4  ;;  %767 = vrot.lane.b32.xlu0 %v3019_v3, %s2643_s12  ;;  %v652_v21 = vor.u32 1.1754944e-38, %v651_v60  ;;  %v682_v58 = vmul.f32 0.25, %v3019_v3 }
 0x16c   : > { %v2348_v9 = vpop.eup %2347  ;;  %v629_v10 = vadd.f32 %v2346_v61, %v628_v6 }
 0x16d   : > { %v2350_v12 = vpop.eup %2349  ;;  %v549_v13 = vadd.f32 1.0, %v2348_v9 }
 0x16e   : > { %v633_v14 = vsel %vm632_vm14, %v2346_v61, %v629_v10  ;;  %v641_v11 = vmul.f32 %v2350_v12, %v548_v32  ;;  %vm646_vm1 = vweird.f32 %v2350_v12 }
 0x16f   : > { %v638_v16 = vsel %vm635_vm15, %v637_v7, %v633_v14  ;;  %2351 = vrcp.f32 %v549_v13  ;;  %vm647_vm2 = vmor %vm645_vm0, %vm646_vm1  ;;  %vm660_vm5 = vweird.f32 %v549_v13  ;;  %v666_v27 = vand.u32 2147483648, %v549_v13 }
 0x170   : > { %v3024_v17 = vmul.f32 %v638_v16, %v2975_v15  ;;  %v642_v18 = vsub.f32 1.0, %v641_v11  ;;  %v664_v31 = vand.u32 2147483647, %v549_v13 }
 0x171   : > { %v667_v1 = vor.u32 1.1754944e-38, %v666_v27 }
 0x172   : > { %v643_v20 = vmul.f32 %v2350_v12, %v642_v18  ;;  %769 = vrot.lane.b32.xlu1 %v3024_v17, %s2643_s12  ;;  %2290 = vrot.lane.b32.xlu0 %v3015_v47, %s2644_s13  ;;  %v3032_v22 = vpack.i.bf16 %v3019_v3, %v3024_v17  ;;  %vm665_vm8 = vcmp.eq.f32.partialorder %v664_v31, 8.507059e+37  ;;  %v683_v32 = vmul.f32 0.25, %v3024_v17 }
 0x174   : > { %v644_v23 = vadd.f32 %v2350_v12, %v643_v20 }
 0x175   : > { %v2352_v15 = vpop.eup %2351 }
 0x176   : > { %v648_v25 = vsel %vm647_vm2, %v2350_v12, %v644_v23  ;;  %v656_v26 = vmul.f32 %v2352_v15, %v549_v13  ;;  %vm661_vm6 = vweird.f32 %v2352_v15 }
 0x177   : > { %v653_v24 = vsel %vm650_vm3, %v652_v21, %v648_v25  ;;  %vm662_vm7 = vmor %vm660_vm5, %vm661_vm6 }
 0x178   : > { %v3035_v28 = vmul.f32 %v653_v24, %v2995_v38  ;;  %v657_v29 = vsub.f32 1.0, %v656_v26  ;;  %v3046_v38 = vpack.i.bf16 %v3001_v43, %v2970_v8 }
 0x17a   : > { %v658_v33 = vmul.f32 %v2352_v15, %v657_v29  ;;  %806 = vrot.lane.b32.xlu2 %v3035_v28, %s2643_s12  ;;  %1138 = vrot.lane.b32.xlu0 %v2992_v30, %s2642_s29  ;;  %v3096_v63 = vmul.f32 0.25, %v3035_v28 }
 0x17c   : > { %v659_v35 = vadd.f32 %v2352_v15, %v658_v33 }
 0x17e   : > { %v663_v36 = vsel %vm662_vm7, %v2352_v15, %v659_v35 }
 0x17f   : > { %v668_v37 = vsel %vm665_vm8, %v667_v1, %v663_v36 }
 0x180   : > { %v3042_v39 = vmul.f32 %v668_v37, %v3007_v55 }
 0x182   : > { %808 = vrot.lane.b32.xlu1 %v3042_v39, %s2643_s12  ;;  %2280 = vrot.lane.b32.xlu2 %v3046_v38, %s2644_s13  ;;  %v3062_v30 = vpack.i.bf16 %v3035_v28, %v3042_v39  ;;  %v685_v5 = vmul.f32 0.25, %v3042_v39 }
 0x183   : > { %1134 = vrot.lane.b32.xlu0 %v680_v40, %s2645_s15 }
 0x18a   : > { %2285 = vrot.lane.b32.xlu1 %v3032_v22, %s2644_s13  ;;  %1179 = vrot.lane.b32.xlu2 %v3024_v17, %s2642_s29 }
 0x18b   : > { %1177 = vrot.lane.b32.xlu0 %v3019_v3, %s2642_s29 }
 0x192   : > { %1140 = vrot.lane.b32.xlu1 %v3004_v51, %s2642_s29 }
 0x193   : > { %2295 = vrot.lane.b32.xlu0 %v3062_v30, %s2644_s13 }
 0x1b4   : > { %v729_v42 = vpop.permute.xlu2 %728 }
 0x1bc   : > { %v689_v44 = vpop.permute.xlu2 %688 }
 0x1c4   : > { %v691_v41 = vpop.permute.xlu0 %690 }
 0x1c5   : > { %2122 = vmatpush.xpose.msk.msra.mxu1 %vm692_vm9, %v691_v41 }
 0x1c9   : > { %2123 = vmatpush.xpose.msk.msra.mxu1 %vm692_vm9, %v689_v44 }
 0x1cc   : > { %2124 = vmatmul.msk.f32.vlgmr.msra.gmra.mxu1 %vm692_vm9, %v3071_v45 }
 0x1d4   : > { %v731_v48 = vpop.permute.xlu1 %730  ;;  %v807_v49 = vpop.permute.xlu2 %806  ;;  %2125 = vmatmul.msk.f32.gmra.mxu1 %vm692_vm9, %v3076_v46 }
 0x1d5   : > { %2126 = vmatpush.xpose.msk.msra.mxu3 %vm692_vm9, %v731_v48 }
 0x1d9   : > { %2127 = vmatpush.xpose.msk.msra.mxu3 %vm692_vm9, %v729_v42 }
 0x1dc   : > { %2128 = vmatmul.msk.f32.vlgmr.msra.gmra.mxu3 %vm692_vm9, %v680_v40  ;;  %v2281_v50 = vpop.permute.xlu2 %2280  ;;  %v768_v52 = vpop.permute.xlu0 %767 }
 0x1dd   : > { %v2282_v53 = vunpack.i.l.bf16 %v2281_v50  ;;  %v2283_v54 = vunpack.i.h.bf16 %v2281_v50 }
 0x1df   : > { %941 = vmatpush.msra.mxu2 %v2282_v53 }
 0x1e1   : > { %942 = vmatpush.msra.mxu2 %v2283_v54 }
 0x1e4   : > { %v770_v55 = vpop.permute.xlu1 %769  ;;  %2129 = vmatmul.msk.f32.gmra.mxu3 %vm692_vm9, %v681_v34  ;;  %v2291_v56 = vpop.permute.xlu0 %2290 }
 0x1e5   : > { %2130 = vmatpush.xpose.msk.msrb.mxu3 %vm692_vm9, %v770_v55  ;;  %v2292_v57 = vunpack.i.l.bf16 %v2291_v56  ;;  %v2293_v59 = vunpack.i.h.bf16 %v2291_v56  ;;  %v1180_v26 = vpop.permute.xlu2 %1179 }
 0x1e9   : > { %2131 = vmatpush.xpose.msk.msrb.mxu3 %vm692_vm9, %v768_v52 }
 0x1ec   : > { %2132 = vmatmul.msk.f32.vlgmr.msrb.gmra.mxu3 %vm692_vm9, %v682_v58  ;;  %v1139_v61 = vpop.permute.xlu0 %1138 }
 0x1ed   : > { %976 = vmatpush.msra.mxu3 %v2292_v57 }
 0x1ef   : > { %977 = vmatpush.msra.mxu3 %v2293_v59 }
 0x1f4   : > { %v809_v51 = vpop.permute.xlu1 %808  ;;  %2133 = vmatmul.msk.f32.gmra.mxu3 %vm692_vm9, %v683_v32 }
 0x1f5   : > { %v3091_v62 = vpop.permute.xlu0 %1134  ;;  %2134 = vmatpush.xpose.msk.msrb.mxu1 %vm692_vm9, %v809_v51 }
 0x1f9   : > { %2135 = vmatpush.xpose.msk.msrb.mxu1 %vm692_vm9, %v807_v49 }
 0x1fc   : > { %v2286_v0 = vpop.permute.xlu1 %2285  ;;  %2136 = vmatmul.msk.f32.vlgmr.msrb.gmra.mxu1 %vm692_vm9, %v3096_v63 }
 0x1fd   : > { %v2287_v2 = vunpack.i.l.bf16 %v2286_v0  ;;  %v1178_v3 = vpop.permute.xlu0 %1177  ;;  %v2288_v4 = vunpack.i.h.bf16 %v2286_v0 }
 0x1ff   : > { %1011 = vmatpush.msra.mxu1 %v2287_v2 }
 0x201   : > { %1012 = vmatpush.msra.mxu1 %v2288_v4 }
 0x204   : > { %v1141_v6 = vpop.permute.xlu1 %1140  ;;  %2137 = vmatmul.msk.f32.gmra.mxu1 %vm692_vm9, %v685_v5 }
 0x205   : > { %v2296_v7 = vpop.permute.xlu0 %2295  ;;  %2150 = vmatpush.xpose.msk.msrb.mxu1 %vm692_vm9, %v1141_v6 }
 0x206   : > { %v2297_v9 = vunpack.i.l.bf16 %v2296_v7  ;;  %v2298_v10 = vunpack.i.h.bf16 %v2296_v7 }
 0x208   : > { %1046 = vmatpush.msrb.mxu2 %v2297_v9 }
 0x209   : > { %2151 = vmatpush.xpose.msk.msrb.mxu1 %vm692_vm9, %v1139_v61 }
 0x20a   : > { %1047 = vmatpush.msrb.mxu2 %v2298_v10 }
 0x249   : > { %v720_v12 = vpop.f32.mrf.mxu1 }
 0x24a   : > { %v843_v13 = vsel %vm692_vm9, %v720_v12, -inf }
 0x24b   : > { %844 = vmax.xlane.f32.xlu0 %v843_v13 }
 0x251   : > { %v723_v14 = vpop.f32.mrf.mxu1 }
 0x252   : > { %v846_v11 = vsel %vm692_vm9, %v723_v14, -inf }
 0x253   : > { %847 = vmax.xlane.f32.xlu2 %v846_v11 }
 0x25f   : > { %v759_v16 = vpop.f32.mrf.mxu3 }
 0x260   : > { %v849_v60 = vsel %vm692_vm9, %v759_v16, -inf }
 0x261   : > { %850 = vmax.xlane.f32.xlu0 %v849_v60 }
 0x267   : > { %v762_v17 = vpop.f32.mrf.mxu3 }
 0x268   : > { %v852_v18 = vsel %vm692_vm9, %v762_v17, -inf }
 0x269   : > { %853 = vmax.xlane.f32.xlu1 %v852_v18 }
 0x26b   : > { %1099 = vrot.lane.b32.xlu2 %v3001_v43, %s2642_s29 }
 0x26f   : > { %v798_v19 = vpop.f32.mrf.mxu3 }
 0x270   : > { %v855_v20 = vsel %vm692_vm9, %v798_v19, -inf }
 0x271   : > { %856 = vmax.xlane.f32.xlu1 %v855_v20 }
 0x273   : > { %1175 = vrot.lane.b32.xlu2 %v683_v32, %s2645_s15 }
 0x275   : > { %1101 = vrot.lane.b32.xlu0 %v2970_v8, %s2642_s29 }
 0x277   : > { %v801_v8 = vpop.f32.mrf.mxu3 }
 0x278   : > { %v858_v15 = vsel %vm692_vm9, %v801_v8, -inf }
 0x279   : > { %v3118_v21 = vpop.f32.mrf.mxu1 }
 0x27a   : > { %v861_v25 = vsel %vm692_vm9, %v3118_v21, -inf }
 0x27d   : > { %1173 = vrot.lane.b32.xlu0 %v682_v58, %s2645_s15 }
 0x281   : > { %v3122_v43 = vpop.f32.mrf.mxu1 }
 0x282   : > { %v864_v23 = vsel %vm692_vm9, %v3122_v43, -inf }
 0x285   : > { %1095 = vrot.lane.b32.xlu0 %v3071_v45, %s2645_s15 }
 0x28a   : > { %1136 = vrot.lane.b32.xlu1 %v681_v34, %s2645_s15 }
 0x292   : > { %1218 = vrot.lane.b32.xlu1 %v3042_v39, %s2642_s29 }
 0x29a   : > { %1214 = vrot.lane.b32.xlu1 %v685_v5, %s2645_s15 }
 0x29c   : > { %865 = vmax.xlane.f32.xlu2 %v864_v23 }
 0x2a2   : > { %2300 = vrot.lane.b32.xlu1 %v3015_v47, %s2646_s27 }
 0x2af   : > { %859 = vmax.xlane.f32.xlu0 %v858_v15 }
 0x2b4   : > { %1216 = vrot.lane.b32.xlu2 %v3035_v28, %s2642_s29  ;;  %s1999_s29 = sshll.u32 %s1996_s24, 4  ;;  %s2000_s29 = int_to_ptr.hbm [resolvable:$true] %s1999_s29 }
 0x2b5   : > { %s2579_s9 = sshra.s32 %s2000_s29, 4  ;;  %s2580_s9 = int_to_ptr.hbm [resolvable:$true] %s2579_s9 }
 0x2b6   : > { %s2581_s12 = scalar_lea.hbm %s2580_s9, 64  ;;  %p2586_p11 = scmp.lt.s32.totalorder %s2580_s9, %s3529_s5 }
 0x2b7   : > { %862 = vmax.xlane.f32.xlu0 %v861_v25  ;;  %p2582_p1 = scmp.ne.s32.totalorder %s2580_s9, %s2581_s12 }
 0x2b9   : > { %p2583_p4 = pnand %p2582_p1, %p2753_p3 }
 0x2bb   : > { %p2584_p8 = pneg %p2583_p4 }
 0x2be   : > { %v845_v24 = vpop.xlane.xlu0 %844 }
 0x2bf   : > { %v867_v27 = vsub.f32 %v720_v12, %v845_v24 }
 0x2c1   : > { %v875_v29 = vmul.f32 1.442695, %v867_v27 }
 0x2c3   : > { %2353 = vpow2.f32 %v875_v29 }
 0x2c6   : > { %v848_v31 = vpop.xlane.xlu2 %847 }
 0x2c7   : > { %v868_v33 = vsub.f32 %v723_v14, %v848_v31 }
 0x2c9   : > { %v3134_v1 = vpop.eup %2353  ;;  %v877_v47 = vmul.f32 1.442695, %v868_v33 }
 0x2ca   : > { %2138 = vmatmul.msk.f32.vlgmr.msra.gmra.mxu2 %vm692_vm9, %v3134_v1 }
 0x2cb   : > { %2355 = vpow2.f32 %v877_v47  ;;  %2154 = vmatpush.xpose.msk.msra.mxu2 %vm692_vm9, %v1180_v26  ;;  %1097 = vrot.lane.b32.xlu0 %v3076_v46, %s2645_s15 }
 0x2cf   : > { %2155 = vmatpush.xpose.msk.msra.mxu2 %vm692_vm9, %v1178_v3 }
 0x2d1   : > { %v3142_v28 = vpop.eup %2355 }
 0x2d2   : > { %2139 = vmatmul.msk.f32.gmra.mxu2 %vm692_vm9, %v3142_v28 }
 0x2d3   : > { %1212 = vrot.lane.b32.xlu0 %v3096_v63, %s2645_s15 }
 0x2d4   : > { %v851_v35 = vpop.xlane.xlu0 %850 }
 0x2d5   : > { %v869_v36 = vsub.f32 %v759_v16, %v851_v35 }
 0x2d7   : > { %v879_v37 = vmul.f32 1.442695, %v869_v36 }
 0x2d9   : > { %2357 = vpow2.f32 %v879_v37 }
 0x2db   : > { %2305 = vrot.lane.b32.xlu0 %v3032_v22, %s2646_s27  ;;  %v1100_v22 = vpop.permute.xlu2 %1099 }
 0x2dc   : > { %v854_v39 = vpop.xlane.xlu1 %853 }
 0x2dd   : > { %v870_v40 = vsub.f32 %v762_v17, %v854_v39 }
 0x2df   : > { %v3150_v42 = vpop.eup %2357  ;;  %v881_v41 = vmul.f32 1.442695, %v870_v40 }
 0x2e0   : > { %2140 = vmatmul.msk.f32.vlgmr.msra.gmra.mxu3 %vm692_vm9, %v3150_v42 }
 0x2e1   : > { %2359 = vpow2.f32 %v881_v41 }
 0x2e3   : > { %v1176_v55 = vpop.permute.xlu2 %1175 }
 0x2e4   : > { %v857_v44 = vpop.xlane.xlu1 %856 }
 0x2e5   : > { %v871_v45 = vsub.f32 %v798_v19, %v857_v44 }
 0x2e7   : > { %v3154_v46 = vpop.eup %2359  ;;  %v883_v48 = vmul.f32 1.442695, %v871_v45  ;;  %v1102_v49 = vpop.permute.xlu0 %1101 }
 0x2e8   : > { %2141 = vmatmul.msk.f32.gmra.mxu3 %vm692_vm9, %v3154_v46  ;;  %v900_v41 = vsel %vm692_vm9, %v3154_v46, 0.0 }
 0x2e9   : > { %2361 = vpow2.f32 %v883_v48  ;;  %2146 = vmatpush.xpose.msk.msrb.mxu3 %vm692_vm9, %v1102_v49 }
 0x2ed   : > { %2147 = vmatpush.xpose.msk.msrb.mxu3 %vm692_vm9, %v1100_v22 }
 0x2ef   : > { %v3160_v50 = vpop.eup %2361  ;;  %v1174_v52 = vpop.permute.xlu0 %1173 }
 0x2f0   : > { %2142 = vmatmul.msk.f32.vlgmr.msra.gmra.mxu1 %vm692_vm9, %v3160_v50 }
 0x2f7   : > { %v1096_v53 = vpop.permute.xlu0 %1095 }
 0x2f8   : > { %2148 = vmatmul.msk.f32.vlgmr.msrb.gmra.mxu3 %vm692_vm9, %v1096_v53 }
 0x2fc   : > { %v1137_v54 = vpop.permute.xlu1 %1136 }
 0x304   : > { %v1219_v34 = vpop.permute.xlu1 %1218 }
 0x305   : > { %2158 = vmatpush.xpose.msk.msra.mxu3 %vm692_vm9, %v1219_v34 }
 0x30c   : > { %v1215_v32 = vpop.permute.xlu1 %1214 }
 0x30f   : > { %v866_v56 = vpop.xlane.xlu2 %865 }
 0x310   : > { %v874_v3 = vsub.f32 %v3122_v43, %v866_v56 }
 0x312   : > { %v889_v5 = vmul.f32 1.442695, %v874_v3 }
 0x314   : > { %v2301_v4 = vpop.permute.xlu1 %2300 }
 0x315   : > { %v2302_v7 = vunpack.i.l.bf16 %v2301_v4  ;;  %v2303_v9 = vunpack.i.h.bf16 %v2301_v4 }
 0x317   : > { %v1217_v57 = vpop.permute.xlu2 %1216 }
 0x318   : > { %2159 = vmatpush.xpose.msk.msra.mxu3 %vm692_vm9, %v1217_v57 }
 0x322   : > { %v860_v58 = vpop.xlane.xlu0 %859 }
 0x323   : > { %v872_v59 = vsub.f32 %v801_v8, %v860_v58 }
 0x325   : > { %v885_v61 = vmul.f32 1.442695, %v872_v59 }
 0x327   : > { %2363 = vpow2.f32 %v885_v61 }
 0x32a   : > { %v863_v51 = vpop.xlane.xlu0 %862 }
 0x32b   : > { %v873_v63 = vsub.f32 %v3118_v21, %v863_v51 }
 0x32d   : > { %v3168_v0 = vpop.eup %2363  ;;  %v887_v2 = vmul.f32 1.442695, %v873_v63 }
 0x32e   : > { %2143 = vmatmul.msk.f32.gmra.mxu1 %vm692_vm9, %v3168_v0 }
 0x32f   : > { %2365 = vpow2.f32 %v887_v2 }
 0x330   : > { %2367 = vpow2.f32 %v889_v5 }
 0x335   : > { %v3173_v6 = vpop.eup %2365 }
 0x336   : > { %2144 = vmatmul.msk.f32.vlgmr.msrb.gmra.mxu2 %vm692_vm9, %v3173_v6  ;;  %2152 = vmatmul.msk.f32.vlgmr.msrb.gmra.mxu1 %vm692_vm9, %v3091_v62  ;;  %v3179_v10 = vpop.eup %2367 }
 0x337   : > { %1384 = vmatpush.msrb.mxu2 %v2302_v7 }
 0x339   : > { %1385 = vmatpush.msrb.mxu2 %v2303_v9 }
 0x33d   : > { %v1098_v12 = vpop.permute.xlu0 %1097 }
 0x33e   : > { %2145 = vmatmul.msk.f32.gmra.mxu2 %vm692_vm9, %v3179_v10  ;;  %2149 = vmatmul.msk.f32.gmra.mxu3 %vm692_vm9, %v1098_v12  ;;  %v906_v12 = vsel %vm692_vm9, %v3168_v0, 0.0 }
 0x33f   : > { %2153 = vmatmul.msk.f32.gmra.mxu1 %vm692_vm9, %v1137_v54 }
 0x345   : > { %v1213_v13 = vpop.permute.xlu0 %1212 }
 0x346   : > { %2156 = vmatmul.msk.f32.vlgmr.msra.gmra.mxu2 %vm692_vm9, %v1174_v52  ;;  %2160 = vmatmul.msk.f32.vlgmr.msra.gmra.mxu3 %vm692_vm9, %v1213_v13 }
 0x34d   : > { %v2306_v62 = vpop.permute.xlu0 %2305  ;;  %v3191_v60 = vpop.f32.mrf.mxu2 }
 0x34e   : > { %v2307_v14 = vunpack.i.l.bf16 %v2306_v62  ;;  %2157 = vmatmul.msk.f32.gmra.mxu2 %vm692_vm9, %v1176_v55  ;;  %2161 = vmatmul.msk.f32.gmra.mxu3 %vm692_vm9, %v1215_v32  ;;  %v2308_v11 = vunpack.i.h.bf16 %v2306_v62 }
 0x350   : > { %1419 = vmatpush.msrb.mxu3 %v2307_v14 }
 0x352   : > { %1420 = vmatpush.msrb.mxu3 %v2308_v11 }
 0x355   : > { %v3197_v19 = vpop.f32.mrf.mxu2 }
 0x363   : > { %v3193_v17 = vpop.f32.mrf.mxu3 }
 0x36b   : > { %v3200_v43 = vpop.f32.mrf.mxu3 }
 0x36d   : > { %v3189_v16 = vpop.f32.mrf.mxu1 }
 0x37b   : > { %v3204_v15 = vpop.f32.mrf.mxu3 }
 0x37c   : > { %v1251_v36 = vsel %vm692_vm9, %v3204_v15, -inf }
 0x3ab   : > { %v3195_v18 = vpop.f32.mrf.mxu1 }
 0x3b3   : > { %v1167_v20 = vpop.f32.mrf.mxu1 }
 0x3b4   : > { %v1257_v21 = vsel %vm692_vm9, %v1167_v20, -inf }
 0x3b5   : > { %1258 = vmax.xlane.f32.xlu2 %v1257_v21 }
 0x3b9   : > { %v3202_v23 = vpop.f32.mrf.mxu2 }
 0x3bc   : > { %v1170_v8 = vpop.f32.mrf.mxu1 }
 0x3bd   : > { %v1260_v25 = vsel %vm692_vm9, %v1170_v8, -inf }
 0x3be   : > { %1261 = vmax.xlane.f32.xlu0 %v1260_v25 }
 0x3c1   : > { %v3207_v26 = vpop.f32.mrf.mxu2  ;;  %v3209_v24 = vpop.f32.mrf.mxu3 }
 0x3c2   : > { %v1254_v37 = vsel %vm692_vm9, %v3209_v24, -inf }
 0x3c9   : > { %v1206_v27 = vpop.f32.mrf.mxu2  ;;  %v1245_v31 = vpop.f32.mrf.mxu3 }
 0x3ca   : > { %v1263_v29 = vsel %vm692_vm9, %v1206_v27, -inf  ;;  %v1269_v35 = vsel %vm692_vm9, %v1245_v31, -inf }
 0x3cb   : > { %1264 = vmax.xlane.f32.xlu1 %v1263_v29 }
 0x3d1   : > { %v1209_v33 = vpop.f32.mrf.mxu2  ;;  %v3220_v39 = vpop.f32.mrf.mxu3 }
 0x3d2   : > { %2315 = vrot.lane.b32.xlu0 %v3062_v30, %s2646_s27  ;;  %v1266_v47 = vsel %vm692_vm9, %v1209_v33, -inf  ;;  %v1272_v40 = vsel %vm692_vm9, %v3220_v39, -inf  ;;  %v903_v30 = vsel %vm692_vm9, %v3160_v50, 0.0 }
 0x3d3   : > { %1267 = vmax.xlane.f32.xlu2 %v1266_v47  ;;  %1270 = vmax.xlane.f32.xlu1 %v1269_v35  ;;  %v912_v47 = vsel %vm692_vm9, %v3179_v10, 0.0 }
 0x3db   : > { %1252 = vmax.xlane.f32.xlu2 %v1251_v36 }
 0x3e3   : > { %1255 = vmax.xlane.f32.xlu2 %v1254_v37 }
 0x3eb   : > { %1273 = vmax.xlane.f32.xlu2 %v1272_v40  ;;  %v891_v40 = vsel %vm692_vm9, %v3134_v1, 0.0 }
 0x3ec   : > { %2310 = vrot.lane.b32.xlu1 %v3046_v38, %s2646_s27  ;;  %s2585_s27 = scalar_lea.hbm %s3529_s5, 128 }
 0x3ed   : > { %p2587_p2 = scmp.lt.s32.totalorder %s2585_s27, %s2581_s12 }
 0x3ef   : > { %p2588_p9 = por %p2587_p2, %p2586_p11 }
 0x3f1   : > { %p2589_p10 = pnand %p2588_p9, %p2584_p8 }
 0x3f3   : > { %904 = vadd.xlane.f32.xlu2 %v903_v30 }
 0x3fc   : > { %901 = vadd.xlane.f32.xlu0 %v900_v41 }
 0x428   : > { %v1259_v44 = vpop.xlane.xlu2 %1258 }
 0x429   : > { %v1277_v45 = vsub.f32 %v1167_v20, %v1259_v44  ;;  %v909_v20 = vsel %vm692_vm9, %v3173_v6, 0.0 }
 0x42b   : > { %v1287_v48 = vmul.f32 1.442695, %v1277_v45 }
 0x42d   : > { %2369 = vpow2.f32 %v1287_v48 }
 0x431   : > { %v1262_v49 = vpop.xlane.xlu0 %1261 }
 0x432   : > { %v1278_v22 = vsub.f32 %v1170_v8, %v1262_v49 }
 0x433   : > { %v3230_v52 = vpop.eup %2369 }
 0x434   : > { %v1289_v53 = vmul.f32 1.442695, %v1278_v22  ;;  %2164 = vmatmul.msk.f32.vlgmr.msrb.gmra.mxu2 %vm692_vm9, %v3230_v52  ;;  %v1305_v35 = vsel %vm692_vm9, %v3230_v52, 0.0 }
 0x436   : > { %2371 = vpow2.f32 %v1289_v53 }
 0x43c   : > { %v3234_v38 = vpop.eup %2371 }
 0x43d   : > { %2165 = vmatmul.msk.f32.gmra.mxu2 %vm692_vm9, %v3234_v38  ;;  %v1308_v37 = vsel %vm692_vm9, %v3234_v38, 0.0 }
 0x43e   : > { %v1265_v46 = vpop.xlane.xlu1 %1264 }
 0x43f   : > { %v1279_v50 = vsub.f32 %v1206_v27, %v1265_v46 }
 0x441   : > { %v1291_v54 = vmul.f32 1.442695, %v1279_v50 }
 0x443   : > { %2373 = vpow2.f32 %v1291_v54 }
 0x444   : > { %v2316_v34 = vpop.permute.xlu0 %2315 }
 0x445   : > { %v2317_v55 = vunpack.i.l.bf16 %v2316_v34  ;;  %v2318_v61 = vunpack.i.h.bf16 %v2316_v34 }
 0x446   : > { %v1271_v56 = vpop.xlane.xlu1 %1270  ;;  %v1268_v57 = vpop.xlane.xlu2 %1267 }
 0x447   : > { %1454 = vmatpush.msrb.mxu0 %v2317_v55  ;;  %v1281_v58 = vsub.f32 %v1245_v31, %v1271_v56  ;;  %v1280_v59 = vsub.f32 %v1209_v33, %v1268_v57 }
 0x449   : > { %v2374_v32 = vpop.eup %2373  ;;  %v1295_v51 = vmul.f32 1.442695, %v1281_v58  ;;  %v1293_v63 = vmul.f32 1.442695, %v1280_v59  ;;  %1455 = vmatpush.msrb.mxu0 %v2318_v61 }
 0x44a   : > { %2166 = vmatmul.msk.f32.vlgmr.msrb.gmra.mxu3 %vm692_vm9, %v2374_v32  ;;  %v1311_v2 = vsel %vm692_vm9, %v2374_v32, 0.0 }
 0x44b   : > { %2375 = vpow2.f32 %v1295_v51  ;;  %1312 = vadd.xlane.f32.xlu0 %v1311_v2 }
 0x44c   : > { %2377 = vpow2.f32 %v1293_v63 }
 0x44e   : > { %v1253_v3 = vpop.xlane.xlu2 %1252 }
 0x44f   : > { %v1275_v4 = vsub.f32 %v3204_v15, %v1253_v3 }
 0x451   : > { %v2376_v5 = vpop.eup %2375  ;;  %v1283_v7 = vmul.f32 1.442695, %v1275_v4 }
 0x452   : > { %v2378_v9 = vpop.eup %2377  ;;  %2168 = vmatmul.msk.f32.vlgmr.msrb.gmra.mxu0 %vm692_vm9, %v2376_v5  ;;  %v1317_v36 = vsel %vm692_vm9, %v2376_v5, 0.0 }
 0x453   : > { %2379 = vpow2.f32 %v1283_v7  ;;  %2167 = vmatmul.msk.f32.gmra.mxu3 %vm692_vm9, %v2378_v9  ;;  %907 = vadd.xlane.f32.xlu0 %v906_v12 }
 0x456   : > { %v1256_v13 = vpop.xlane.xlu2 %1255 }
 0x457   : > { %v1276_v62 = vsub.f32 %v3209_v24, %v1256_v13  ;;  %v894_v24 = vsel %vm692_vm9, %v3142_v28, 0.0  ;;  %v897_v28 = vsel %vm692_vm9, %v3150_v42, 0.0 }
 0x459   : > { %v2380_v14 = vpop.eup %2379  ;;  %v1285_v11 = vmul.f32 1.442695, %v1276_v62 }
 0x45a   : > { %v1299_v21 = vsel %vm692_vm9, %v2380_v14, 0.0 }
 0x45b   : > { %2381 = vpow2.f32 %v1285_v11  ;;  %910 = vadd.xlane.f32.xlu0 %v909_v20  ;;  %1300 = vadd.xlane.f32.xlu1 %v1299_v21 }
 0x45e   : > { %v2311_v8 = vpop.permute.xlu1 %2310  ;;  %v1274_v15 = vpop.xlane.xlu2 %1273 }
 0x45f   : > { %v2312_v0 = vunpack.i.l.bf16 %v2311_v8  ;;  %v1282_v25 = vsub.f32 %v3220_v39, %v1274_v15  ;;  %v2313_v29 = vunpack.i.h.bf16 %v2311_v8  ;;  %v1314_v39 = vsel %vm692_vm9, %v2378_v9, 0.0 }
 0x461   : > { %v2382_v27 = vpop.eup %2381  ;;  %v1297_v31 = vmul.f32 1.442695, %v1282_v25  ;;  %1349 = vmatpush.msra.mxu1 %v2312_v0 }
 0x462   : > { %v1302_v33 = vsel %vm692_vm9, %v2382_v27, 0.0 }
 0x463   : > { %2383 = vpow2.f32 %v1297_v31  ;;  %895 = vadd.xlane.f32.xlu0 %v894_v24  ;;  %1350 = vmatpush.msra.mxu1 %v2313_v29 }
 0x464   : > { %1303 = vadd.xlane.f32.xlu2 %v1302_v33  ;;  %2162 = vmatmul.msk.f32.vlgmr.msra.gmra.mxu1 %vm692_vm9, %v2380_v14 }
 0x466   : > { %v3271_v53 = vpop.xlane.xlu2 %904 }
 0x469   : > { %v2384_v6 = vpop.eup %2383 }
 0x46a   : > { %2169 = vmatmul.msk.f32.gmra.mxu0 %vm692_vm9, %v2384_v6  ;;  %v1320_v10 = vsel %vm692_vm9, %v2384_v6, 0.0  ;;  %v1546_v6 = vld [vmem:[#allocation7 + $0x18] sm:$0xff] }
 0x46b   : > { %913 = vadd.xlane.f32.xlu0 %v912_v47  ;;  %v1545_v47 = vld [vmem:[#allocation7 + $0x10] sm:$0xff]  ;;  %1587 = vmatpush.msrb.mxu1 %v1546_v6 }
 0x46c   : > { %1306 = vadd.xlane.f32.xlu2 %v1305_v35  ;;  %2163 = vmatmul.msk.f32.gmra.mxu1 %vm692_vm9, %v2382_v27 }
 0x46d   : > { %2196 = vmatpush.msra.mxu2 %v1546_v6  ;;  %1588 = vmatpush.msrb.mxu1 %v1545_v47 }
 0x46f   : > { %v3269_v30 = vpop.xlane.xlu0 %901  ;;  %2197 = vmatpush.msra.mxu2 %v1545_v47 }
 0x473   : > { %898 = vadd.xlane.f32.xlu0 %v897_v28 }
 0x474   : > { %1318 = vadd.xlane.f32.xlu2 %v1317_v36  ;;  %v1544_v36 = vld [vmem:[#allocation7 + $0x8] sm:$0xff] }
 0x475   : > { %1589 = vmatpush.msrb.mxu1 %v1544_v36  ;;  %2198 = vmatpush.msra.mxu2 %v1544_v36 }
 0x47c   : > { %1309 = vadd.xlane.f32.xlu2 %v1308_v37 }
 0x484   : > { %1321 = vadd.xlane.f32.xlu2 %v1320_v10 }
 0x48c   : > { %1315 = vadd.xlane.f32.xlu2 %v1314_v39 }
 0x494   : > { %892 = vadd.xlane.f32.xlu2 %v891_v40 }
 0x4b7   : > { %v1387_v3 = vpop.f32.mrf.mxu2 }
 0x4be   : > { %v1313_v42 = vpop.xlane.xlu0 %1312 }
 0x4bf   : > { %2385 = vrcp.f32 %v1313_v42 }
 0x4c0   : > { %v1390_v13 = vpop.f32.mrf.mxu2 }
 0x4c5   : > { %v2386_v41 = vpop.eup %2385 }
 0x4c6   : > { %v1475_v44 = vmul.f32 %v2386_v41, %v1313_v42 }
 0x4c8   : > { %v1483_v45 = vsub.f32 2.0, %v1475_v44 }
 0x4ca   : > { %v1491_v48 = vmul.f32 %v2386_v41, %v1483_v45 }
 0x4cd   : > { %v1422_v49 = vpop.f32.mrf.mxu3 }
 0x4ce   : > { %v1499_v22 = vmul.f32 %v1491_v48, %v1422_v49  ;;  %v1301_v52 = vpop.xlane.xlu1 %1300  ;;  %v1543_v49 = vld [vmem:[#allocation7] sm:$0xff] }
 0x4cf   : > { %2387 = vrcp.f32 %v1301_v52  ;;  %v1457_v62 = vpop.f32.mrf.mxu0  ;;  %1590 = vmatpush.msrb.mxu1 %v1543_v49  ;;  %2199 = vmatpush.msra.mxu2 %v1543_v49 }
 0x4d0   : > { %1519 = vrot.lane.b32.xlu2 %v1499_v22, %s2647_s30 }
 0x4d5   : > { %v2388_v38 = vpop.eup %2387 }
 0x4d6   : > { %v1471_v46 = vmul.f32 %v2388_v38, %v1301_v52  ;;  %v1425_v28 = vpop.f32.mrf.mxu3 }
 0x4d7   : > { %v1304_v1 = vpop.xlane.xlu2 %1303 }
 0x4d8   : > { %2389 = vrcp.f32 %v1304_v1  ;;  %v1479_v50 = vsub.f32 2.0, %v1471_v46 }
 0x4da   : > { %v1487_v56 = vmul.f32 %v2388_v38, %v1479_v50  ;;  %v908_v38 = vpop.xlane.xlu0 %907 }
 0x4de   : > { %v2390_v54 = vpop.eup %2389 }
 0x4df   : > { %v1307_v34 = vpop.xlane.xlu2 %1306  ;;  %v1472_v55 = vmul.f32 %v2390_v54, %v1304_v1 }
 0x4e1   : > { %v1352_v57 = vpop.f32.mrf.mxu1  ;;  %v1480_v59 = vsub.f32 2.0, %v1472_v55 }
 0x4e2   : > { %v1495_v58 = vmul.f32 %v1487_v56, %v1352_v57 }
 0x4e3   : > { %v1488_v32 = vmul.f32 %v2390_v54, %v1480_v59  ;;  %v911_v54 = vpop.xlane.xlu0 %910 }
 0x4e4   : > { %1511 = vrot.lane.b32.xlu2 %v1495_v58, %s2647_s30 }
 0x4e7   : > { %v1319_v61 = vpop.xlane.xlu2 %1318  ;;  %v1460_v0 = vpop.f32.mrf.mxu0 }
 0x4e9   : > { %v1355_v51 = vpop.f32.mrf.mxu1 }
 0x4ea   : > { %v1496_v63 = vmul.f32 %v1488_v32, %v1355_v51 }
 0x4eb   : > { %v896_v58 = vpop.xlane.xlu0 %895 }
 0x4ec   : > { %1513 = vrot.lane.b32.xlu0 %v1496_v63, %s2647_s30 }
 0x4ef   : > { %v1310_v2 = vpop.xlane.xlu2 %1309 }
 0x4f0   : > { %2391 = vrcp.f32 %v1310_v2 }
 0x4f3   : > { %v914_v59 = vpop.xlane.xlu0 %913 }
 0x4f6   : > { %v2392_v4 = vpop.eup %2391 }
 0x4f7   : > { %v1474_v5 = vmul.f32 %v2392_v4, %v1310_v2  ;;  %v1322_v7 = vpop.xlane.xlu2 %1321 }
 0x4f8   : > { %2393 = vrcp.f32 %v1322_v7 }
 0x4f9   : > { %v1482_v9 = vsub.f32 2.0, %v1474_v5  ;;  %2395 = vrcp.f32 %v1319_v61 }
 0x4fb   : > { %v1490_v12 = vmul.f32 %v2392_v4, %v1482_v9  ;;  %v899_v63 = vpop.xlane.xlu0 %898 }
 0x4fd   : > { %v1498_v14 = vmul.f32 %v1490_v12, %v1390_v13 }
 0x4fe   : > { %v2394_v11 = vpop.eup %2393 }
 0x4ff   : > { %v1478_v20 = vmul.f32 %v2394_v11, %v1322_v7  ;;  %1517 = vrot.lane.b32.xlu1 %v1498_v14, %s2647_s30  ;;  %v1316_v21 = vpop.xlane.xlu2 %1315  ;;  %v2396_v25 = vpop.eup %2395 }
 0x500   : > { %2397 = vrcp.f32 %v1316_v21  ;;  %v1477_v24 = vmul.f32 %v2396_v25, %v1319_v61 }
 0x501   : > { %v1486_v8 = vsub.f32 2.0, %v1478_v20  ;;  %2399 = vrcp.f32 %v1307_v34 }
 0x502   : > { %v1485_v37 = vsub.f32 2.0, %v1477_v24 }
 0x503   : > { %v1494_v15 = vmul.f32 %v2394_v11, %v1486_v8 }
 0x504   : > { %v1493_v42 = vmul.f32 %v2396_v25, %v1485_v37 }
 0x505   : > { %v1502_v27 = vmul.f32 %v1494_v15, %v1460_v0 }
 0x506   : > { %v2398_v29 = vpop.eup %2397  ;;  %v1501_v44 = vmul.f32 %v1493_v42, %v1457_v62 }
 0x507   : > { %v1476_v31 = vmul.f32 %v2398_v29, %v1316_v21  ;;  %1525 = vrot.lane.b32.xlu2 %v1502_v27, %s2647_s30  ;;  %v2400_v39 = vpop.eup %2399  ;;  %v893_v22 = vpop.xlane.xlu2 %892 }
 0x508   : > { %v1473_v40 = vmul.f32 %v2400_v39, %v1307_v34  ;;  %2401 = vrcp.f32 %v893_v22 }
 0x509   : > { %v1484_v33 = vsub.f32 2.0, %v1476_v31  ;;  %2403 = vrcp.f32 %v896_v58 }
 0x50a   : > { %v1481_v41 = vsub.f32 2.0, %v1473_v40  ;;  %2405 = vrcp.f32 %v3269_v30 }
 0x50b   : > { %v1492_v35 = vmul.f32 %v2398_v29, %v1484_v33  ;;  %2407 = vrcp.f32 %v3271_v53 }
 0x50c   : > { %v1489_v45 = vmul.f32 %v2400_v39, %v1481_v41  ;;  %2409 = vrcp.f32 %v908_v38 }
 0x50d   : > { %v1500_v10 = vmul.f32 %v1492_v35, %v1425_v28  ;;  %2411 = vrcp.f32 %v911_v54 }
 0x50e   : > { %v1497_v48 = vmul.f32 %v1489_v45, %v1387_v3  ;;  %v2402_v52 = vpop.eup %2401  ;;  %2413 = vrcp.f32 %v914_v59 }
 0x50f   : > { %1521 = vrot.lane.b32.xlu1 %v1500_v10, %s2647_s30  ;;  %v1063_v1 = vmul.f32 %v2402_v52, %v893_v22  ;;  %v2404_v61 = vpop.eup %2403  ;;  %2415 = vrcp.f32 %v899_v63 }
 0x510   : > { %v1064_v32 = vmul.f32 %v2404_v61, %v896_v58  ;;  %v2406_v5 = vpop.eup %2405 }
 0x511   : > { %v1071_v46 = vsub.f32 2.0, %v1063_v1  ;;  %v1066_v7 = vmul.f32 %v2406_v5, %v3269_v30  ;;  %v2408_v12 = vpop.eup %2407 }
 0x512   : > { %v1072_v51 = vsub.f32 2.0, %v1064_v32  ;;  %v1067_v13 = vmul.f32 %v2408_v12, %v3271_v53 }
 0x513   : > { %v1079_v34 = vmul.f32 %v2402_v52, %v1071_v46  ;;  %v1074_v9 = vsub.f32 2.0, %v1066_v7 }
 0x514   : > { %v1080_v2 = vmul.f32 %v2404_v61, %v1072_v51  ;;  %v1075_v14 = vsub.f32 2.0, %v1067_v13  ;;  %v2467_v61 = vld [vmem:[%s2792_s28] sm:$0xff] }
 0x515   : > { %v1087_v55 = vmul.f32 %v1079_v34, %v3191_v60  ;;  %v1082_v62 = vmul.f32 %v2406_v5, %v1074_v9  ;;  %v1776_v32 = vmul.f32 2.0, %v2467_v61 }
 0x516   : > { %v1088_v3 = vmul.f32 %v1080_v2, %v3197_v19  ;;  %v2410_v19 = vpop.eup %2409  ;;  %v1083_v8 = vmul.f32 %v2408_v12, %v1075_v14 }
 0x517   : > { %1523 = vrot.lane.b32.xlu1 %v1501_v44, %s2647_s30  ;;  %v1090_v11 = vmul.f32 %v1082_v62, %v3200_v43  ;;  %v1068_v15 = vmul.f32 %v2410_v19, %v908_v38  ;;  %v2412_v25 = vpop.eup %2411 }
 0x518   : > { %v1091_v30 = vmul.f32 %v1083_v8, %v3189_v16  ;;  %v1069_v27 = vmul.f32 %v2412_v25, %v911_v54  ;;  %v2414_v29 = vpop.eup %2413 }
 0x519   : > { %v1076_v0 = vsub.f32 2.0, %v1068_v15  ;;  %v2416_v33 = vpop.eup %2415  ;;  %v1070_v35 = vmul.f32 %v2414_v29, %v914_v59 }
 0x51a   : > { %v1077_v31 = vsub.f32 2.0, %v1069_v27  ;;  %v1065_v28 = vmul.f32 %v2416_v33, %v899_v63 }
 0x51b   : > { %v1084_v43 = vmul.f32 %v2410_v19, %v1076_v0  ;;  %v1078_v36 = vsub.f32 2.0, %v1070_v35 }
 0x51c   : > { %v1085_v16 = vmul.f32 %v2412_v25, %v1077_v31  ;;  %v1073_v37 = vsub.f32 2.0, %v1065_v28  ;;  %v2468_v25 = vld [vmem:[%s2792_s28 + $0x8] sm:$0xff] }
 0x51d   : > { %v1092_v24 = vmul.f32 %v1084_v43, %v3195_v18  ;;  %v1086_v42 = vmul.f32 %v2414_v29, %v1078_v36 }
 0x51e   : > { %v1093_v10 = vmul.f32 %v1085_v16, %v3202_v23  ;;  %v1081_v18 = vmul.f32 %v2416_v33, %v1073_v37  ;;  %v3312_v23 = vld [vmem:[%s3528_s4] ss:$0 sm:$0xff] }
 0x51f   : > { %1515 = vrot.lane.b32.xlu1 %v1497_v48, %s2647_s30  ;;  %v1094_v45 = vmul.f32 %v1086_v42, %v3207_v26 }
 0x520   : > { %v1089_v44 = vmul.f32 %v1081_v18, %v3193_v17 }
 0x52a   : > { %v1520_v50 = vpop.permute.xlu2 %1519 }
 0x52b   : > { %v1539_v53 = vsel %vm692_vm9, %v1091_v30, %v1520_v50 }
 0x53e   : > { %v1512_v56 = vpop.permute.xlu2 %1511 }
 0x53f   : > { %v1535_v57 = vsel %vm692_vm9, %v1087_v55, %v1512_v56 }
 0x540   : > { %2170 = vmatmul.msk.f32.vlgmr.msrb.gmra.mxu1 %vm418_vm4, %v1535_v57 }
 0x55e   : > { %v1514_v4 = vpop.permute.xlu0 %1513 }
 0x55f   : > { %v1536_v60 = vsel %vm692_vm9, %v1088_v3, %v1514_v4 }
 0x560   : > { %2171 = vmatmul.msk.f32.gmra.mxu1 %vm418_vm4, %v1536_v60 }
 0x561   : > { %v1526_v41 = vpop.permute.xlu2 %1525 }
 0x562   : > { %v1542_v22 = vsel %vm692_vm9, %v1094_v45, %v1526_v41 }
 0x571   : > { %v1518_v20 = vpop.permute.xlu1 %1517 }
 0x572   : > { %v1538_v21 = vsel %vm692_vm9, %v1090_v11, %v1518_v20 }
 0x573   : > { %2173 = vmatmul.msk.f32.vlgmr.msra.gmra.mxu2 %vm418_vm4, %v1538_v21 }
 0x57b   : > { %2174 = vmatmul.msk.f32.gmra.mxu2 %vm418_vm4, %v1539_v53  ;;  %v1777_v53 = vmul.f32 2.0, %v2468_v25 }
 0x581   : > { %v1522_v6 = vpop.permute.xlu1 %1521 }
 0x582   : > { %v1540_v47 = vsel %vm692_vm9, %v1092_v24, %v1522_v6 }
 0x583   : > { %2175 = vmatmul.msk.f32.gmra.mxu2 %vm418_vm4, %v1540_v47 }
 0x589   : > { %v1524_v39 = vpop.permute.xlu1 %1523 }
 0x58a   : > { %v1541_v40 = vsel %vm692_vm9, %v1093_v10, %v1524_v39 }
 0x58b   : > { %2176 = vmatmul.msk.f32.gmra.mxu2 %vm418_vm4, %v1541_v40 }
 0x591   : > { %v1516_v48 = vpop.permute.xlu1 %1515 }
 0x592   : > { %v1537_v49 = vsel %vm692_vm9, %v1089_v44, %v1516_v48 }
 0x593   : > { %2172 = vmatmul.msk.f32.gmra.mxu1 %vm418_vm4, %v1537_v49  ;;  %2177 = vmatmul.msk.f32.gmra.mxu2 %vm418_vm4, %v1542_v22 }
 0x5bd   : > { %v1592_v52 = vpop.f32.mrf.mxu1 }
 0x5be   : > { %v1593_v38 = vadd.f32 %v3312_v23, %v1592_v52 }
 0x5c0   : > { %v2178_v17 = vmul.f32 -1.442695, %v1593_v38 }
 0x5c2   : > { %2417 = vpow2.f32 %v2178_v17 }
 0x5c8   : > { %v2418_v26 = vpop.eup %2417 }
 0x5c9   : > { %v1640_v1 = vadd.f32 1.0, %v2418_v26 }
 0x5cb   : > { %2419 = vrcp.f32 %v1640_v1  ;;  %v1659_v34 = vand.u32 2147483648, %v1640_v1  ;;  %v1657_v56 = vand.u32 2147483647, %v1640_v1  ;;  %vm1653_vm11 = vweird.f32 %v1640_v1 }
 0x5cd   : > { %v1660_v58 = vor.u32 1.1754944e-38, %v1659_v34  ;;  %vm1658_vm13 = vcmp.eq.f32.partialorder %v1657_v56, 8.507059e+37 }
 0x5d1   : > { %v2420_v46 = vpop.eup %2419 }
 0x5d2   : > { %v1649_v50 = vmul.f32 %v2420_v46, %v1640_v1  ;;  %vm1654_vm10 = vweird.f32 %v2420_v46 }
 0x5d3   : > { %vm1655_vm12 = vmor %vm1653_vm11, %vm1654_vm10 }
 0x5d4   : > { %v1650_v54 = vsub.f32 1.0, %v1649_v50 }
 0x5d6   : > { %v1651_v55 = vmul.f32 %v2420_v46, %v1650_v54 }
 0x5d8   : > { %v1652_v57 = vadd.f32 %v2420_v46, %v1651_v55  ;;  %v2469_v55 = vld [vmem:[%s2792_s28 + $0x18] sm:$0xff] }
 0x5d9   : > { %v1779_v56 = vmul.f32 2.0, %v2469_v55 }
 0x5da   : > { %v1656_v59 = vsel %vm1655_vm12, %v2420_v46, %v1652_v57 }
 0x5db   : > { %v1661_v51 = vsel %vm1658_vm13, %v1660_v58, %v1656_v59 }
 0x5dc   : > { %v1768_v63 = vmul.f32 %v1661_v51, %v1593_v38 }
 0x5dd   : > { %v1595_v2 = vpop.f32.mrf.mxu1 }
 0x5de   : > { %v1596_v3 = vadd.f32 %v3312_v23, %v1595_v2  ;;  %v3317_v4 = vadd.f32 %v1776_v32, %v1768_v63 }
 0x5e0   : > { %v2179_v60 = vmul.f32 -1.442695, %v1596_v3  ;;  %v1792_v5 = vsel %vm418_vm4, %v3317_v4, 0.0 }
 0x5e1   : > { %1793 = vadd.xlane.f32.xlu2 %v1792_v5 }
 0x5e2   : > { %2421 = vpow2.f32 %v2179_v60 }
 0x5e8   : > { %v2422_v7 = vpop.eup %2421 }
 0x5e9   : > { %v1641_v9 = vadd.f32 1.0, %v2422_v7 }
 0x5eb   : > { %2423 = vrcp.f32 %v1641_v9  ;;  %v1674_v14 = vand.u32 2147483648, %v1641_v9  ;;  %v1672_v19 = vand.u32 2147483647, %v1641_v9  ;;  %vm1668_vm15 = vweird.f32 %v1641_v9 }
 0x5ed   : > { %v1675_v15 = vor.u32 1.1754944e-38, %v1674_v14  ;;  %vm1673_vm1 = vcmp.eq.f32.partialorder %v1672_v19, 8.507059e+37 }
 0x5f1   : > { %v2424_v12 = vpop.eup %2423 }
 0x5f2   : > { %v1664_v13 = vmul.f32 %v2424_v12, %v1641_v9  ;;  %vm1669_vm14 = vweird.f32 %v2424_v12 }
 0x5f3   : > { %vm1670_vm0 = vmor %vm1668_vm15, %vm1669_vm14 }
 0x5f4   : > { %v1665_v62 = vsub.f32 1.0, %v1664_v13 }
 0x5f6   : > { %v1666_v11 = vmul.f32 %v2424_v12, %v1665_v62  ;;  %v1601_v20 = vpop.f32.mrf.mxu2 }
 0x5f7   : > { %v1602_v21 = vadd.f32 %v3312_v23, %v1601_v20 }
 0x5f8   : > { %v1667_v8 = vadd.f32 %v2424_v12, %v1666_v11 }
 0x5f9   : > { %v2181_v0 = vmul.f32 -1.442695, %v1602_v21 }
 0x5fa   : > { %v1671_v30 = vsel %vm1670_vm0, %v2424_v12, %v1667_v8 }
 0x5fb   : > { %v1676_v43 = vsel %vm1673_vm1, %v1675_v15, %v1671_v30  ;;  %2425 = vpow2.f32 %v2181_v0 }
 0x5fc   : > { %v1769_v27 = vmul.f32 %v1676_v43, %v1596_v3 }
 0x5fe   : > { %v1604_v29 = vpop.f32.mrf.mxu2  ;;  %v3323_v31 = vadd.f32 %v1777_v53, %v1769_v27 }
 0x5ff   : > { %v3326_v24 = vadd.f32 %v3312_v23, %v1604_v29 }
 0x600   : > { %v1795_v33 = vsel %vm418_vm4, %v3323_v31, 0.0 }
 0x601   : > { %v2426_v6 = vpop.eup %2425  ;;  %v2182_v47 = vmul.f32 -1.442695, %v3326_v24  ;;  %1796 = vadd.xlane.f32.xlu1 %v1795_v33 }
 0x602   : > { %v1643_v16 = vadd.f32 1.0, %v2426_v6 }
 0x603   : > { %2427 = vpow2.f32 %v2182_v47 }
 0x604   : > { %2429 = vrcp.f32 %v1643_v16  ;;  %v1704_v18 = vand.u32 2147483648, %v1643_v16  ;;  %v1702_v45 = vand.u32 2147483647, %v1643_v16  ;;  %vm1698_vm3 = vweird.f32 %v1643_v16 }
 0x606   : > { %v1607_v35 = vpop.f32.mrf.mxu2  ;;  %v1705_v1 = vor.u32 1.1754944e-38, %v1704_v18  ;;  %vm1703_vm6 = vcmp.eq.f32.partialorder %v1702_v45, 8.507059e+37 }
 0x607   : > { %v3332_v28 = vadd.f32 %v3312_v23, %v1607_v35 }
 0x609   : > { %v2428_v36 = vpop.eup %2427  ;;  %v2183_v37 = vmul.f32 -1.442695, %v3332_v28 }
 0x60a   : > { %v2430_v10 = vpop.eup %2429  ;;  %v1644_v39 = vadd.f32 1.0, %v2428_v36 }
 0x60b   : > { %v1694_v40 = vmul.f32 %v2430_v10, %v1643_v16  ;;  %2431 = vpow2.f32 %v2183_v37  ;;  %vm1699_vm2 = vweird.f32 %v2430_v10  ;;  %v2471_v37 = vld [vmem:[%s2792_s28 + $0x30] sm:$0xff] }
 0x60c   : > { %2433 = vrcp.f32 %v1644_v39  ;;  %vm1700_vm5 = vmor %vm1698_vm3, %vm1699_vm2  ;;  %v1717_v61 = vand.u32 2147483647, %v1644_v39  ;;  %v1719_v32 = vand.u32 2147483648, %v1644_v39  ;;  %vm1713_vm8 = vweird.f32 %v1644_v39 }
 0x60d   : > { %v1695_v42 = vsub.f32 1.0, %v1694_v40 }
 0x60e   : > { %v1610_v41 = vpop.f32.mrf.mxu2  ;;  %v1720_v9 = vor.u32 1.1754944e-38, %v1719_v32  ;;  %vm1718_vm10 = vcmp.eq.f32.partialorder %v1717_v61, 8.507059e+37 }
 0x60f   : > { %v1696_v44 = vmul.f32 %v2430_v10, %v1695_v42  ;;  %v3336_v48 = vadd.f32 %v3312_v23, %v1610_v41 }
 0x610   : > { %v1598_v49 = vpop.f32.mrf.mxu1 }
 0x611   : > { %v2432_v22 = vpop.eup %2431  ;;  %v1697_v52 = vadd.f32 %v2430_v10, %v1696_v44  ;;  %v2184_v38 = vmul.f32 -1.442695, %v3336_v48  ;;  %v3340_v17 = vadd.f32 %v3312_v23, %v1598_v49 }
 0x612   : > { %v2434_v26 = vpop.eup %2433  ;;  %v3342_v46 = vadd.f32 1.0, %v2432_v22 }
 0x613   : > { %v1701_v50 = vsel %vm1700_vm5, %v2430_v10, %v1697_v52  ;;  %v1709_v54 = vmul.f32 %v2434_v26, %v1644_v39  ;;  %2435 = vpow2.f32 %v2184_v38  ;;  %v2180_v59 = vmul.f32 -1.442695, %v3340_v17  ;;  %v2472_v39 = vld [vmem:[%s2792_s28 + $0x10] sm:$0xff] }
 0x614   : > { %v1706_v34 = vsel %vm1703_vm6, %v1705_v1, %v1701_v50  ;;  %2437 = vrcp.f32 %v3342_v46  ;;  %vm1714_vm7 = vweird.f32 %v2434_v26  ;;  %vm1728_vm12 = vweird.f32 %v3342_v46 }
 0x615   : > { %v1771_v57 = vmul.f32 %v1706_v34, %v1602_v21  ;;  %v1710_v58 = vsub.f32 1.0, %v1709_v54  ;;  %2439 = vpow2.f32 %v2180_v59  ;;  %vm1715_vm9 = vmor %vm1713_vm8, %vm1714_vm7  ;;  %v1782_v10 = vmul.f32 2.0, %v2471_v37 }
 0x616   : > { %v1613_v51 = vpop.f32.mrf.mxu2  ;;  %v1778_v40 = vmul.f32 2.0, %v2472_v39  ;;  %v1732_v1 = vand.u32 2147483647, %v3342_v46  ;;  %v1734_v50 = vand.u32 2147483648, %v3342_v46 }
 0x617   : > { %v1711_v63 = vmul.f32 %v2434_v26, %v1710_v58  ;;  %v3348_v2 = vadd.f32 %v3312_v23, %v1613_v51  ;;  %v3350_v3 = vadd.f32 %v1779_v56, %v1771_v57  ;;  %v2470_v23 = vld [vmem:[%s2792_s28 + $0x20] sm:$0xff] }
 0x618   : > { %v1780_v11 = vmul.f32 2.0, %v2470_v23  ;;  %vm1733_vm8 = vcmp.eq.f32.partialorder %v1732_v1, 8.507059e+37  ;;  %v2473_v23 = vld [vmem:[%s2792_s28 + $0x38] sm:$0xff] }
 0x619   : > { %v2436_v60 = vpop.eup %2435  ;;  %v1712_v5 = vadd.f32 %v2434_v26, %v1711_v63  ;;  %v2185_v7 = vmul.f32 -1.442695, %v3348_v2  ;;  %v1801_v13 = vsel %vm418_vm4, %v3350_v3, 0.0 }
 0x61a   : > { %v1646_v12 = vadd.f32 1.0, %v2436_v60  ;;  %v3355_v62 = vpop.eup %2437  ;;  %1802 = vadd.xlane.f32.xlu2 %v1801_v13 }
 0x61b   : > { %v1716_v14 = vsel %vm1715_vm9, %v2434_v26, %v1712_v5  ;;  %2441 = vpow2.f32 %v2185_v7  ;;  %v2440_v20 = vpop.eup %2439  ;;  %v1724_v8 = vmul.f32 %v3355_v62, %v3342_v46  ;;  %vm1729_vm13 = vweird.f32 %v3355_v62 }
 0x61c   : > { %v1721_v19 = vsel %vm1718_vm10, %v1720_v9, %v1716_v14  ;;  %2443 = vrcp.f32 %v1646_v12  ;;  %v1642_v15 = vadd.f32 1.0, %v2440_v20  ;;  %v1747_v47 = vand.u32 2147483647, %v1646_v12  ;;  %vm3381_vm3 = vmor %vm1728_vm12, %vm1729_vm13 }
 0x61d   : > { %v1772_v21 = vmul.f32 %v1721_v19, %v3326_v24  ;;  %v1725_v43 = vsub.f32 1.0, %v1724_v8  ;;  %v1749_v16 = vand.u32 2147483648, %v1646_v12  ;;  %vm1743_vm14 = vweird.f32 %v1646_v12  ;;  %v2474_v8 = vld [vmem:[%s2792_s28 + $0x28] sm:$0xff] }
 0x61e   : > { %2445 = vrcp.f32 %v1642_v15  ;;  %v1687_v41 = vand.u32 2147483647, %v1642_v15  ;;  %vm1748_vm0 = vcmp.eq.f32.partialorder %v1747_v47, 8.507059e+37  ;;  %v1689_v22 = vand.u32 2147483648, %v1642_v15 }
 0x61f   : > { %v3361_v0 = vadd.f32 %v1780_v11, %v1772_v21  ;;  %v1726_v6 = vmul.f32 %v3355_v62, %v1725_v43  ;;  %v1750_v49 = vor.u32 1.1754944e-38, %v1749_v16  ;;  %vm1683_vm2 = vweird.f32 %v1642_v15 }
 0x620   : > { %vm1688_vm5 = vcmp.eq.f32.partialorder %v1687_v41, 8.507059e+37  ;;  %v1690_v59 = vor.u32 1.1754944e-38, %v1689_v22  ;;  %v1783_v11 = vmul.f32 2.0, %v2473_v23  ;;  %v2648_v43 = vmov 32.0  }
 0x621   : > { %v2442_v30 = vpop.eup %2441  ;;  %v1804_v25 = vsel %vm418_vm4, %v3361_v0, 0.0  ;;  %v1727_v45 = vadd.f32 %v3355_v62, %v1726_v6 }
 0x622   : > { %v2444_v53 = vpop.eup %2443  ;;  %v3365_v27 = vadd.f32 1.0, %v2442_v30  ;;  %1805 = vadd.xlane.f32.xlu1 %v1804_v25 }
 0x623   : > { %v1739_v29 = vmul.f32 %v2444_v53, %v1646_v12  ;;  %vm1744_vm11 = vweird.f32 %v2444_v53  ;;  %v1731_v58 = vsel %vm3381_vm3, %v3355_v62, %v1727_v45 }
 0x624   : > { %2447 = vrcp.f32 %v3365_v27  ;;  %v2446_v33 = vpop.eup %2445  ;;  %vm1745_vm15 = vmor %vm1743_vm14, %vm1744_vm11  ;;  %v1762_v61 = vand.u32 2147483647, %v3365_v27  ;;  %v1764_v32 = vand.u32 2147483648, %v3365_v27  ;;  %vm1758_vm9 = vweird.f32 %v3365_v27 }
 0x625   : > { %v1740_v24 = vsub.f32 1.0, %v1739_v29  ;;  %v1679_v36 = vmul.f32 %v2446_v33, %v1642_v15  ;;  %vm1684_vm1 = vweird.f32 %v2446_v33  ;;  %v1781_v15 = vmul.f32 2.0, %v2474_v8 }
 0x626   : > { %vm1685_vm6 = vmor %vm1683_vm2, %vm1684_vm1  ;;  %v1765_v13 = vor.u32 1.1754944e-38, %v1764_v32  ;;  %vm1763_vm11 = vcmp.eq.f32.partialorder %v1762_v61, 8.507059e+37  ;;  %2449 = vrcp.f32 %v2648_v43 }
 0x627   : > { %v1741_v35 = vmul.f32 %v2444_v53, %v1740_v24  ;;  %v1680_v18 = vsub.f32 1.0, %v1679_v36 }
 0x629   : > { %v1742_v42 = vadd.f32 %v2444_v53, %v1741_v35  ;;  %v1681_v38 = vmul.f32 %v2446_v33, %v1680_v18 }
 0x62a   : > { %v2448_v44 = vpop.eup %2447 }
 0x62b   : > { %v1746_v52 = vsel %vm1745_vm15, %v2444_v53, %v1742_v42  ;;  %v1754_v26 = vmul.f32 %v2448_v44, %v3365_v27  ;;  %v1682_v56 = vadd.f32 %v2446_v33, %v1681_v38  ;;  %vm1759_vm7 = vweird.f32 %v2448_v44 }
 0x62c   : > { %v1751_v54 = vsel %vm1748_vm0, %v1750_v49, %v1746_v52  ;;  %vm1760_vm10 = vmor %vm1758_vm9, %vm1759_vm7  ;;  %v2450_v29 = vpop.eup %2449 }
 0x62d   : > { %v1774_v55 = vmul.f32 %v1751_v54, %v3336_v48  ;;  %v1755_v57 = vsub.f32 1.0, %v1754_v26  ;;  %v1686_v46 = vsel %vm1685_vm6, %v2446_v33, %v1682_v56  ;;  %v1735_v48 = vor.u32 1.1754944e-38, %v1734_v50 }
 0x62e   : > { %v1691_v60 = vsel %vm1688_vm5, %v1690_v59, %v1686_v46  ;;  %v1817_v24 = vmul.f32 32.0, %v2450_v29  ;;  %vm1821_vm12 = vweird.f32 %v2450_v29 }
 0x62f   : > { %v1756_v51 = vmul.f32 %v2448_v44, %v1755_v57  ;;  %v3391_v63 = vadd.f32 %v1782_v10, %v1774_v55  ;;  %v1770_v5 = vmul.f32 %v1691_v60, %v3340_v17  ;;  %v1736_v12 = vsel %vm1733_vm8, %v1735_v48, %v1731_v58 }
 0x630   : > { %v1773_v20 = vmul.f32 %v1736_v12, %v3332_v28  ;;  %v1818_v28 = vsub.f32 1.0, %v1817_v24 }
 0x631   : > { %v1757_v7 = vadd.f32 %v2448_v44, %v1756_v51  ;;  %v1810_v9 = vsel %vm418_vm4, %v3391_v63, 0.0  ;;  %v1786_v14 = vadd.f32 %v1778_v40, %v1770_v5 }
 0x632   : > { %1811 = vadd.xlane.f32.xlu2 %v1810_v9  ;;  %v1789_v53 = vadd.f32 %v1781_v15, %v1773_v20  ;;  %v1819_v33 = vmul.f32 %v2450_v29, %v1818_v28 }
 0x633   : > { %v1761_v62 = vsel %vm1760_vm10, %v2448_v44, %v1757_v7  ;;  %v1798_v21 = vsel %vm418_vm4, %v1786_v14, 0.0 }
 0x634   : > { %v1766_v19 = vsel %vm1763_vm11, %v1765_v13, %v1761_v62  ;;  %1799 = vadd.xlane.f32.xlu0 %v1798_v21  ;;  %v1807_v27 = vsel %vm418_vm4, %v1789_v53, 0.0 }
 0x635   : > { %v1775_v17 = vmul.f32 %v1766_v19, %v3348_v2  ;;  %v1820_v2 = vadd.f32 %v2450_v29, %v1819_v33 }
 0x637   : > { %v1791_v30 = vadd.f32 %v1783_v11, %v1775_v17  ;;  %v3404_v6 = vsel %vm1821_vm12, %v2450_v29, %v1820_v2 }
 0x639   : > { %v1813_v25 = vsel %vm418_vm4, %v1791_v30, 0.0 }
 0x63a   : > { %1814 = vadd.xlane.f32.xlu1 %v1813_v25 }
 0x63c   : > { %1808 = vadd.xlane.f32.xlu0 %v1807_v27 }
 0x654   : > { %v1794_v47 = vpop.xlane.xlu2 %1793 }
 0x655   : > { %v1823_v16 = vmul.f32 %v3404_v6, %v1794_v47 }
 0x657   : > { %v1831_v35 = vsub.f32 %v3317_v4, %v1823_v16 }
 0x659   : > { %v1839_v36 = vmul.f32 %v1831_v35, %v1831_v35 }
 0x65b   : > { %v1847_v37 = vsel %vm418_vm4, %v1839_v36, 0.0 }
 0x65c   : > { %1848 = vadd.xlane.f32.xlu0 %v1847_v37 }
 0x674   : > { %v1797_v10 = vpop.xlane.xlu1 %1796 }
 0x675   : > { %v1824_v39 = vmul.f32 %v3404_v6, %v1797_v10 }
 0x677   : > { %v3411_v40 = vsub.f32 %v3323_v31, %v1824_v39 }
 0x679   : > { %v1840_v42 = vmul.f32 %v3411_v40, %v3411_v40 }
 0x67b   : > { %v1850_v18 = vsel %vm418_vm4, %v1840_v42, 0.0 }
 0x67c   : > { %1851 = vadd.xlane.f32.xlu2 %v1850_v18 }
 0x68d   : > { %v1803_v41 = vpop.xlane.xlu2 %1802 }
 0x68e   : > { %v1826_v44 = vmul.f32 %v3404_v6, %v1803_v41 }
 0x690   : > { %v3418_v4 = vsub.f32 %v3350_v3, %v1826_v44 }
 0x692   : > { %v1842_v45 = vmul.f32 %v3418_v4, %v3418_v4 }
 0x694   : > { %v1856_v22 = vsel %vm418_vm4, %v1842_v45, 0.0 }
 0x695   : > { %v1806_v49 = vpop.xlane.xlu1 %1805  ;;  %1857 = vadd.xlane.f32.xlu0 %v1856_v22 }
 0x696   : > { %v1827_v31 = vmul.f32 %v3404_v6, %v1806_v49 }
 0x698   : > { %v3425_v52 = vsub.f32 %v3361_v0, %v1827_v31 }
 0x69a   : > { %v1843_v38 = vmul.f32 %v3425_v52, %v3425_v52 }
 0x69c   : > { %v1859_v26 = vsel %vm418_vm4, %v1843_v38, 0.0 }
 0x69d   : > { %1860 = vadd.xlane.f32.xlu2 %v1859_v26 }
 0x6a5   : > { %v1812_v3 = vpop.xlane.xlu2 %1811 }
 0x6a6   : > { %v1829_v1 = vmul.f32 %v3404_v6, %v1812_v3 }
 0x6a7   : > { %v1800_v54 = vpop.xlane.xlu0 %1799 }
 0x6a8   : > { %v3432_v50 = vsub.f32 %v3391_v63, %v1829_v1  ;;  %v1825_v34 = vmul.f32 %v3404_v6, %v1800_v54 }
 0x6aa   : > { %v1845_v55 = vmul.f32 %v3432_v50, %v3432_v50  ;;  %v3437_v0 = vsub.f32 %v1786_v14, %v1825_v34 }
 0x6ac   : > { %v1865_v56 = vsel %vm418_vm4, %v1845_v55, 0.0  ;;  %v1841_v59 = vmul.f32 %v3437_v0, %v3437_v0 }
 0x6ad   : > { %v1815_v57 = vpop.xlane.xlu1 %1814  ;;  %1866 = vadd.xlane.f32.xlu0 %v1865_v56 }
 0x6ae   : > { %v1830_v58 = vmul.f32 %v3404_v6, %v1815_v57  ;;  %v1853_v32 = vsel %vm418_vm4, %v1841_v59, 0.0 }
 0x6af   : > { %v1809_v46 = vpop.xlane.xlu0 %1808  ;;  %1854 = vadd.xlane.f32.xlu1 %v1853_v32 }
 0x6b0   : > { %v3443_v61 = vsub.f32 %v1791_v30, %v1830_v58  ;;  %v1828_v51 = vmul.f32 %v3404_v6, %v1809_v46 }
 0x6b2   : > { %v1846_v63 = vmul.f32 %v3443_v61, %v3443_v61  ;;  %v3449_v48 = vsub.f32 %v1789_v53, %v1828_v51 }
 0x6b4   : > { %v1868_v60 = vsel %vm418_vm4, %v1846_v63, 0.0  ;;  %v1844_v5 = vmul.f32 %v3449_v48, %v3449_v48 }
 0x6b5   : > { %1869 = vadd.xlane.f32.xlu2 %v1868_v60 }
 0x6b6   : > { %v1862_v7 = vsel %vm418_vm4, %v1844_v5, 0.0 }
 0x6b7   : > { %1863 = vadd.xlane.f32.xlu1 %v1862_v7 }
 0x6cf   : > { %v1849_v9 = vpop.xlane.xlu0 %1848 }
 0x6d0   : > { %v1871_v12 = vmul.f32 %v1849_v9, %v3404_v6 }
 0x6d2   : > { %v1879_v13 = vadd.f32 1e-05, %v1871_v12 }
 0x6d4   : > { %2451 = vrsqrt.f32 %v1879_v13  ;;  %vm1893_vm14 = vweird.f32 %v1879_v13 }
 0x6da   : > { %v2452_v62 = vpop.eup %2451 }
 0x6db   : > { %v1888_v14 = vmul.f32 %v2452_v62, %v1879_v13  ;;  %vm1894_vm13 = vweird.f32 %v2452_v62 }
 0x6dc   : > { %vm1895_vm15 = vmor %vm1893_vm14, %vm1894_vm13 }
 0x6dd   : > { %v1889_v23 = vmul.f32 %v2452_v62, %v1888_v14 }
 0x6df   : > { %v1890_v11 = vmul.f32 0.5, %v1889_v23 }
 0x6e1   : > { %v1891_v19 = vsub.f32 1.5, %v1890_v11 }
 0x6e3   : > { %v1892_v20 = vmul.f32 %v2452_v62, %v1891_v19 }
 0x6e5   : > { %v1896_v17 = vsel %vm1895_vm15, %v2452_v62, %v1892_v20 }
 0x6e6   : > { %v1967_v21 = vmul.f32 %v1896_v17, %v1831_v35 }
 0x6e8   : > { %1975 = vst.msk [vmem:[%s3458_s26] sm:$0xff] %vm418_vm4, %v1967_v21 }
 0x6ef   : > { %v1852_v8 = vpop.xlane.xlu2 %1851 }
 0x6f0   : > { %v1872_v15 = vmul.f32 %v1852_v8, %v3404_v6 }
 0x6f2   : > { %v1880_v30 = vadd.f32 1e-05, %v1872_v15 }
 0x6f4   : > { %2453 = vrsqrt.f32 %v1880_v30  ;;  %vm1903_vm1 = vweird.f32 %v1880_v30 }
 0x6fa   : > { %v2454_v25 = vpop.eup %2453 }
 0x6fb   : > { %v1898_v53 = vmul.f32 %v2454_v25, %v1880_v30  ;;  %vm1904_vm0 = vweird.f32 %v2454_v25 }
 0x6fc   : > { %vm1905_vm2 = vmor %vm1903_vm1, %vm1904_vm0 }
 0x6fd   : > { %v1899_v43 = vmul.f32 %v2454_v25, %v1898_v53 }
 0x6ff   : > { %v1900_v27 = vmul.f32 0.5, %v1899_v43 }
 0x701   : > { %v1901_v29 = vsub.f32 1.5, %v1900_v27 }
 0x703   : > { %v1902_v24 = vmul.f32 %v2454_v25, %v1901_v29 }
 0x705   : > { %v1906_v28 = vsel %vm1905_vm2, %v2454_v25, %v1902_v24 }
 0x706   : > { %v1968_v33 = vmul.f32 %v1906_v28, %v3411_v40 }
 0x708   : > { %1976 = vst.msk [vmem:[%s3458_s26 + $0x8] sm:$0xff] %vm418_vm4, %v1968_v33  ;;  %v1858_v2 = vpop.xlane.xlu0 %1857 }
 0x709   : > { %v1874_v47 = vmul.f32 %v1858_v2, %v3404_v6 }
 0x70b   : > { %v1882_v16 = vadd.f32 1e-05, %v1874_v47 }
 0x70d   : > { %2455 = vrsqrt.f32 %v1882_v16  ;;  %vm1923_vm5 = vweird.f32 %v1882_v16 }
 0x710   : > { %v1861_v35 = vpop.xlane.xlu2 %1860 }
 0x711   : > { %v1875_v36 = vmul.f32 %v1861_v35, %v3404_v6 }
 0x713   : > { %v1883_v37 = vadd.f32 1e-05, %v1875_v36  ;;  %v2456_v10 = vpop.eup %2455 }
 0x714   : > { %v1918_v39 = vmul.f32 %v2456_v10, %v1882_v16  ;;  %vm1924_vm3 = vweird.f32 %v2456_v10 }
 0x715   : > { %2457 = vrsqrt.f32 %v1883_v37  ;;  %vm1925_vm6 = vmor %vm1923_vm5, %vm1924_vm3  ;;  %vm1933_vm8 = vweird.f32 %v1883_v37 }
 0x716   : > { %v1919_v42 = vmul.f32 %v2456_v10, %v1918_v39 }
 0x718   : > { %v1920_v18 = vmul.f32 0.5, %v1919_v42 }
 0x71a   : > { %v1921_v44 = vsub.f32 1.5, %v1920_v18 }
 0x71b   : > { %v2458_v41 = vpop.eup %2457 }
 0x71c   : > { %v1928_v40 = vmul.f32 %v2458_v41, %v1883_v37  ;;  %v1922_v45 = vmul.f32 %v2456_v10, %v1921_v44  ;;  %vm1934_vm7 = vweird.f32 %v2458_v41 }
 0x71d   : > { %vm1935_vm9 = vmor %vm1933_vm8, %vm1934_vm7 }
 0x71e   : > { %v1929_v49 = vmul.f32 %v2458_v41, %v1928_v40  ;;  %v1926_v22 = vsel %vm1925_vm6, %v2456_v10, %v1922_v45 }
 0x71f   : > { %v1970_v31 = vmul.f32 %v1926_v22, %v3418_v4 }
 0x720   : > { %v1930_v38 = vmul.f32 0.5, %v1929_v49  ;;  %v1867_v26 = vpop.xlane.xlu0 %1866 }
 0x721   : > { %v1877_v3 = vmul.f32 %v1867_v26, %v3404_v6  ;;  %1978 = vst.msk [vmem:[%s3458_s26 + $0x18] sm:$0xff] %vm418_vm4, %v1970_v31 }
 0x722   : > { %v1931_v1 = vsub.f32 1.5, %v1930_v38  ;;  %v1855_v55 = vpop.xlane.xlu1 %1854 }
 0x723   : > { %v1885_v54 = vadd.f32 1e-05, %v1877_v3  ;;  %v1873_v56 = vmul.f32 %v1855_v55, %v3404_v6 }
 0x724   : > { %v1932_v34 = vmul.f32 %v2458_v41, %v1931_v1 }
 0x725   : > { %2459 = vrsqrt.f32 %v1885_v54  ;;  %v1881_v58 = vadd.f32 1e-05, %v1873_v56  ;;  %vm1953_vm11 = vweird.f32 %v1885_v54 }
 0x726   : > { %v1936_v57 = vsel %vm1935_vm9, %v2458_v41, %v1932_v34 }
 0x727   : > { %v1971_v4 = vmul.f32 %v1936_v57, %v3425_v52  ;;  %2461 = vrsqrt.f32 %v1881_v58  ;;  %vm1913_vm14 = vweird.f32 %v1881_v58 }
 0x728   : > { %v1870_v59 = vpop.xlane.xlu2 %1869 }
 0x729   : > { %1979 = vst.msk [vmem:[%s3458_s26 + $0x20] sm:$0xff] %vm418_vm4, %v1971_v4  ;;  %v1878_v32 = vmul.f32 %v1870_v59, %v3404_v6 }
 0x72a   : > { %v1864_v60 = vpop.xlane.xlu1 %1863 }
 0x72b   : > { %v2460_v46 = vpop.eup %2459  ;;  %v1886_v51 = vadd.f32 1e-05, %v1878_v32  ;;  %v1876_v5 = vmul.f32 %v1864_v60, %v3404_v6 }
 0x72c   : > { %v1948_v63 = vmul.f32 %v2460_v46, %v1885_v54  ;;  %vm1954_vm10 = vweird.f32 %v2460_v46 }
 0x72d   : > { %2463 = vrsqrt.f32 %v1886_v51  ;;  %v2462_v9 = vpop.eup %2461  ;;  %v1884_v12 = vadd.f32 1e-05, %v1876_v5  ;;  %vm1955_vm12 = vmor %vm1953_vm11, %vm1954_vm10  ;;  %vm1963_vm1 = vweird.f32 %v1886_v51 }
 0x72e   : > { %v1949_v7 = vmul.f32 %v2460_v46, %v1948_v63  ;;  %v1908_v62 = vmul.f32 %v2462_v9, %v1881_v58  ;;  %vm1914_vm13 = vweird.f32 %v2462_v9 }
 0x72f   : > { %2465 = vrsqrt.f32 %v1884_v12  ;;  %vm1915_vm15 = vmor %vm1913_vm14, %vm1914_vm13  ;;  %vm1943_vm5 = vweird.f32 %v1884_v12 }
 0x730   : > { %v1950_v13 = vmul.f32 0.5, %v1949_v7  ;;  %v1909_v14 = vmul.f32 %v2462_v9, %v1908_v62 }
 0x732   : > { %v1951_v52 = vsub.f32 1.5, %v1950_v13  ;;  %v1910_v19 = vmul.f32 0.5, %v1909_v14 }
 0x733   : > { %v2464_v23 = vpop.eup %2463 }
 0x734   : > { %v1952_v11 = vmul.f32 %v2460_v46, %v1951_v52  ;;  %v1958_v20 = vmul.f32 %v2464_v23, %v1886_v51  ;;  %v1911_v21 = vsub.f32 1.5, %v1910_v19  ;;  %vm1964_vm0 = vweird.f32 %v2464_v23 }
 0x735   : > { %v2466_v8 = vpop.eup %2465  ;;  %vm1965_vm2 = vmor %vm1963_vm1, %vm1964_vm0 }
 0x736   : > { %v1956_v17 = vsel %vm1955_vm12, %v2460_v46, %v1952_v11  ;;  %v1959_v6 = vmul.f32 %v2464_v23, %v1958_v20  ;;  %v1912_v30 = vmul.f32 %v2462_v9, %v1911_v21  ;;  %v1938_v53 = vmul.f32 %v2466_v8, %v1884_v12 }
 0x737   : > { %v1973_v15 = vmul.f32 %v1956_v17, %v3432_v50  ;;  %vm1944_vm3 = vweird.f32 %v2466_v8 }
 0x738   : > { %v1960_v25 = vmul.f32 0.5, %v1959_v6  ;;  %v1916_v43 = vsel %vm1915_vm15, %v2462_v9, %v1912_v30  ;;  %v1939_v29 = vmul.f32 %v2466_v8, %v1938_v53  ;;  %vm1945_vm6 = vmor %vm1943_vm5, %vm1944_vm3 }
 0x739   : > { %1981 = vst.msk [vmem:[%s3458_s26 + $0x30] sm:$0xff] %vm418_vm4, %v1973_v15  ;;  %v1969_v24 = vmul.f32 %v1916_v43, %v3437_v0 }
 0x73a   : > { %v1961_v27 = vsub.f32 1.5, %v1960_v25  ;;  %v1940_v50 = vmul.f32 0.5, %v1939_v29 }
 0x73b   : > { %1977 = vst.msk [vmem:[%s3458_s26 + $0x10] sm:$0xff] %vm418_vm4, %v1969_v24 }
 0x73c   : > { %v1962_v28 = vmul.f32 %v2464_v23, %v1961_v27  ;;  %v1941_v2 = vsub.f32 1.5, %v1940_v50 }
 0x73e   : > { %v1966_v33 = vsel %vm1965_vm2, %v2464_v23, %v1962_v28  ;;  %v1942_v0 = vmul.f32 %v2466_v8, %v1941_v2 }
 0x73f   : > { %v1974_v47 = vmul.f32 %v1966_v33, %v3443_v61 }
 0x740   : > { %v1946_v16 = vsel %vm1945_vm6, %v2466_v8, %v1942_v0 }
 0x741   : > { %1982 = vst.msk [vmem:[%s3458_s26 + $0x38] sm:$0xff] %vm418_vm4, %v1974_v47  ;;  %v1972_v35 = vmul.f32 %v1946_v16, %v3449_v48 }
 0x743   : > { %1980 = vst.msk [vmem:[%s3458_s26 + $0x28] sm:$0xff] %vm418_vm4, %v1972_v35 }
 0x744   : > { %2592 = shalt.err (!%p2589_p10)
}
 0x745   : > { %s2649_s8 = smov 128   ;;  %s2650_s7 = smov 8  }
 0x746   : > { %2210 = dma.vmem_to_hbm [thread:$0]  (%p2753_p3), %s1998_s22, 1024, %s2000_s29, %s1984_s11, %s2649_s8, %s2649_s8, %s2650_s7  }
 0x747 PF: > { %s2014_s26 = sand.u32 1, %s2623_s18   ;;  %p3541_p12 = scmp.ge.s32.totalorder %s2635_s21, 2 }
 0x748   : > { %s2015_s10 = scalar_lea.sflag [#allocation4], %s2014_s26 }
 0x749   : > { %p2224_p13 = pnand %p3541_p12, %p2716_p6 }
 0x74b   : > { %p2225_p0 = pneg %p2224_p13 }
 0x74d   : > { %2618 = dma.done.wait (%p2225_p0), %s2015_s10, 1024  }
 0x74e   : > { %2620 = vsyncadd (%p2225_p0), %s2015_s10, 4294966272  ;;  %p19_p5 = scmp.ge.s32.totalorder %s2743_s14, 4   ;;  %s3542_s18 = smov %s2627_s19 }
 0x74f   : > { %s3543_s19 = smov %s2631_s20  ;;  %s3544_s20 = smov %s2759_s23 }
 0x750   : > { %s3545_s21 = smov %s2743_s14  ;;  %21 = sbr.rel (!%p19_p5) target bundleno = 6 (0x6), region = 93 }
 0x755   :  { %2021 = vsyncpa [#allocation3], 1 }
 0x756   :  { %2023 = vsyncpa [#allocation3 + $0x1], 1 }
 0x757   :  { %2024 = vsyncpa [#allocation6], 1 }
 0x758   :  { %2025 = vsyncpa [#allocation4], 1 }
 0x759   :  { %2027 = vsyncpa [#allocation4 + $0x1], 1 }

</bundles_post_ra>
